<compile_context>
chip_gen: v7x
topology: tpu7x:2x2x1
jax: 0.10.0
libtpu: 0.0.40
codegen_flags: <defaults>
</compile_context>

<pallas_src>
import jax
import jax.numpy as jnp
from jax.experimental import pallas as pl
from jax.experimental.pallas import tpu as pltpu


# ------------------------------ small helpers -------------------------------
def _round_up(x, m):
    return (x + m - 1) // m * m


_MAX_TM = 2048          # lane-dim (spatial) tile for conv outputs
_MAX_TK_CONV = 1024     # contraction tile for conv matmuls
_MAX_TK_FC = 8192       # contraction tile for fc1

_VMEM_LIMIT_CACHE = None


def _vmem_limit():
    """Generation-aware scoped VMEM budget (75% of physical, capped at 100 MiB)."""
    global _VMEM_LIMIT_CACHE
    if _VMEM_LIMIT_CACHE is None:
        limit = 48 * 1024 * 1024          # safe floor (fits v7x's 64 MiB/TC)
        try:
            info = pltpu.get_tpu_info()
            cap = None
            for attr in ("vmem_capacity_bytes", "vmem_size_bytes", "vmem_bytes"):
                cap = getattr(info, attr, None)
                if cap:
                    break
            if cap:
                limit = int(min(cap * 3 // 4, 100 * 1024 * 1024))
        except Exception:
            pass
        _VMEM_LIMIT_CACHE = limit
    return _VMEM_LIMIT_CACHE


# ---------------------------------------------------------------------------
# Conv-as-matmul kernels (BN scale pre-folded into weights; fused shift + ReLU)
#   w:(C_out,Kp)  x:(B,Kp,Mp)  shift:(C_out,1)  ->  o:(B,C_out,Mp)
# ---------------------------------------------------------------------------
def _conv_batched_singlek_kernel(w_ref, x_ref, shift_ref, o_ref):
    # Whole batch in one block, single K step: no accumulator scratch needed.
    w = w_ref[...]
    shift = shift_ref[...]
    for b in range(x_ref.shape[0]):
        y = jnp.dot(w, x_ref[b], preferred_element_type=jnp.float32) + shift
        o_ref[b] = jnp.maximum(y, 0.0).astype(o_ref.dtype)


def _conv_batched_kernel(w_ref, x_ref, shift_ref, o_ref, acc_ref):
    # Whole batch in one block, K tiled: f32 accumulator across grid axis 0.
    k = pl.program_id(0)

    @pl.when(k == 0)
    def _():
        acc_ref[...] = jnp.zeros_like(acc_ref)

    w = w_ref[...]
    for b in range(x_ref.shape[0]):
        acc_ref[b] += jnp.dot(w, x_ref[b], preferred_element_type=jnp.float32)

    @pl.when(k == pl.num_programs(0) - 1)
    def _():
        y = acc_ref[...] + shift_ref[...][None]
        o_ref[...] = jnp.maximum(y, 0.0).astype(o_ref.dtype)


def _conv_grid_b_singlek_kernel(w_ref, x_ref, shift_ref, o_ref):
    # Grid over (B, M-tiles), single K step: no scratch.
    y = jnp.dot(w_ref[...], x_ref[...],
                preferred_element_type=jnp.float32) + shift_ref[...]
    o_ref[...] = jnp.maximum(y, 0.0).astype(o_ref.dtype)


def _conv_grid_b_kernel(w_ref, x_ref, shift_ref, o_ref, acc_ref):
    # Grid over (B, M-tiles, K-tiles): f32 accumulator across K.
    k = pl.program_id(2)

    @pl.when(k == 0)
    def _():
        acc_ref[...] = jnp.zeros_like(acc_ref)

    acc_ref[...] += jnp.dot(w_ref[...], x_ref[...],
                            preferred_element_type=jnp.float32)

    @pl.when(k == pl.num_programs(2) - 1)
    def _():
        y = acc_ref[...] + shift_ref[...]
        o_ref[...] = jnp.maximum(y, 0.0).astype(o_ref.dtype)


def conv_matmul_bn_relu(w_mat, patches, shift, out_dtype=jnp.bfloat16):
    """out[b,n,m] = relu(sum_k w[n,k]*patches[b,k,m] + shift[n])."""
    C_out, K = w_mat.shape
    B, K2, M = patches.shape
    assert K == K2

    # ---- contraction tile (lane-aligned K) ----------------------------------
    K_lane = _round_up(K, 128)
    if K_lane <= _MAX_TK_CONV:
        tk, K_pad = K_lane, K_lane
    else:
        tk = _MAX_TK_CONV
        K_pad = _round_up(K, tk)
    n_k = K_pad // tk

    # ---- spatial (lane) tile: always 128-aligned ----------------------------
    M_lane = _round_up(M, 128)
    batched = (B * M_lane) <= _MAX_TM   # whole batch fits one lane-dense block
    if M_lane <= _MAX_TM:
        tm, M_pad = M_lane, M_lane
    else:
        tm = _MAX_TM
        M_pad = _round_up(M, tm)
    n_m = M_pad // tm

    # ---- operand prep (single fused pad; bf16 operands on the MXU) ----------
    w_p = w_mat.astype(jnp.bfloat16)
    if K_pad != K:
        w_p = jnp.pad(w_p, ((0, 0), (0, K_pad - K)))
    x_p = patches.astype(jnp.bfloat16)
    if K_pad != K or M_pad != M:
        x_p = jnp.pad(x_p, ((0, 0), (0, K_pad - K), (0, M_pad - M)))
    shift2 = shift.reshape(C_out, 1).astype(jnp.float32)

    vmem = _vmem_limit()
    out_shape = jax.ShapeDtypeStruct((B, C_out, M_pad), out_dtype)

    if batched:
        in_specs = [
            pl.BlockSpec((C_out, tk), lambda k: (0, k)),
            pl.BlockSpec((B, tk, tm), lambda k: (0, k, 0)),
            pl.BlockSpec((C_out, 1), lambda k: (0, 0)),
        ]
        out_spec = pl.BlockSpec((B, C_out, tm), lambda k: (0, 0, 0))
        if n_k == 1:
            out = pl.pallas_call(
                _conv_batched_singlek_kernel,
                out_shape=out_shape, grid=(1,),
                in_specs=in_specs, out_specs=out_spec,
                compiler_params=pltpu.CompilerParams(
                    dimension_semantics=("arbitrary",),
                    vmem_limit_bytes=vmem),
            )(w_p, x_p, shift2)
        else:
            out = pl.pallas_call(
                _conv_batched_kernel,
                out_shape=out_shape, grid=(n_k,),
                in_specs=in_specs, out_specs=out_spec,
                scratch_shapes=[pltpu.VMEM((B, C_out, tm), jnp.float32)],
                compiler_params=pltpu.CompilerParams(
                    dimension_semantics=("arbitrary",),
                    vmem_limit_bytes=vmem),
            )(w_p, x_p, shift2)
    else:
        if n_k == 1:
            out = pl.pallas_call(
                _conv_grid_b_singlek_kernel,
                out_shape=out_shape, grid=(B, n_m),
                in_specs=[
                    pl.BlockSpec((C_out, tk), lambda b, m: (0, 0)),
                    pl.BlockSpec((None, tk, tm), lambda b, m: (b, 0, m)),
                    pl.BlockSpec((C_out, 1), lambda b, m: (0, 0)),
                ],
                out_specs=pl.BlockSpec((None, C_out, tm), lambda b, m: (b, 0, m)),
                compiler_params=pltpu.CompilerParams(
                    dimension_semantics=("parallel", "parallel"),
                    vmem_limit_bytes=vmem),
            )(w_p, x_p, shift2)
        else:
            out = pl.pallas_call(
                _conv_grid_b_kernel,
                out_shape=out_shape, grid=(B, n_m, n_k),
                in_specs=[
                    pl.BlockSpec((C_out, tk), lambda b, m, k: (0, k)),
                    pl.BlockSpec((None, tk, tm), lambda b, m, k: (b, k, m)),
                    pl.BlockSpec((C_out, 1), lambda b, m, k: (0, 0)),
                ],
                out_specs=pl.BlockSpec((None, C_out, tm),
                                       lambda b, m, k: (b, 0, m)),
                scratch_shapes=[pltpu.VMEM((C_out, tm), jnp.float32)],
                compiler_params=pltpu.CompilerParams(
                    dimension_semantics=("parallel", "parallel", "arbitrary"),
                    vmem_limit_bytes=vmem),
            )(w_p, x_p, shift2)

    return out[:, :, :M] if M_pad != M else out


# ---------------------------------------------------------------------------
# im2col: (B, C, D, H, W) -> (B, C*kD*kH*kW, Do*Ho*Wo), no transpose needed.
# K-index order = (c, dz, dy, dx), matching torch weight.reshape(C_out, -1).
# ---------------------------------------------------------------------------
def im2col_3d(x, kernel, stride):
    B, C, D, H, W = x.shape
    kD, kH, kW = kernel
    sD, sH, sW = stride
    Do = (D - kD) // sD + 1
    Ho = (H - kH) // sH + 1
    Wo = (W - kW) // sW + 1
    cols = []
    for dz in range(kD):
        for dy in range(kH):
            for dx in range(kW):
                cols.append(x[:, :,
                              dz:dz + sD * Do:sD,
                              dy:dy + sH * Ho:sH,
                              dx:dx + sW * Wo:sW])
    cols = jnp.stack(cols, axis=2)                      # (B, C, kVol, Do, Ho, Wo)
    patches = cols.reshape(B, C * kD * kH * kW, Do * Ho * Wo)
    return patches, (Do, Ho, Wo)


def conv3d_bn_relu(x, weight, bias, gamma, beta, mean, var, stride, eps=1e-5):
    """PyTorch semantics: Conv3d (no pad) -> BatchNorm3d(eval) -> ReLU; NCDHW."""
    B = x.shape[0]
    C_out = weight.shape[0]
    kD, kH, kW = weight.shape[2:]
    patches, (Do, Ho, Wo) = im2col_3d(x.astype(jnp.bfloat16), (kD, kH, kW), stride)

    # Fold eval-BN scale into the weights (f32) and carry only a shift:
    #   y = conv_nobias(x) * scale + (bias*scale + beta - mean*scale)
    scale = gamma / jnp.sqrt(var + eps)
    w_scaled = weight * scale[:, None, None, None, None]
    shift = beta - mean * scale + bias * scale
    w_mat = w_scaled.reshape(C_out, -1)

    y = conv_matmul_bn_relu(w_mat, patches, shift)       # (B, C_out, Do*Ho*Wo)
    return y.reshape(B, C_out, Do, Ho, Wo)               # NCDHW, no transpose


# ---------------------------------------------------------------------------
# Fused FC head:  relu(x@w1+b1) -> relu(.@w2+b2) -> (dropout: eval id) -> .@w3+b3
# (only the fc1 contraction is tiled over K; w2/w3 stay resident in VMEM)
# ---------------------------------------------------------------------------
def _fc_head_singlek_kernel(x_ref, w1_ref, b1_ref, w2_ref, b2_ref,
                            w3_ref, b3_ref, o_ref):
    h1 = jnp.dot(x_ref[...], w1_ref[...],
                 preferred_element_type=jnp.float32) + b1_ref[...]
    h1 = jnp.maximum(h1, 0.0)
    h2 = jnp.dot(h1.astype(w2_ref.dtype), w2_ref[...],
                 preferred_element_type=jnp.float32) + b2_ref[...]
    h2 = jnp.maximum(h2, 0.0)
    # F.dropout (eval mode) is identity here.
    o = jnp.dot(h2.astype(w3_ref.dtype), w3_ref[...],
                preferred_element_type=jnp.float32) + b3_ref[...]
    o_ref[...] = o.astype(o_ref.dtype)


def _fc_head_kernel(x_ref, w1_ref, b1_ref, w2_ref, b2_ref, w3_ref, b3_ref,
                    o_ref, acc_ref):
    k = pl.program_id(0)

    @pl.when(k == 0)
    def _():
        acc_ref[...] = jnp.zeros_like(acc_ref)

    acc_ref[...] += jnp.dot(x_ref[...], w1_ref[...],
                            preferred_element_type=jnp.float32)

    @pl.when(k == pl.num_programs(0) - 1)
    def _():
        h1 = jnp.maximum(acc_ref[...] + b1_ref[...], 0.0)
        h2 = jnp.dot(h1.astype(w2_ref.dtype), w2_ref[...],
                     preferred_element_type=jnp.float32) + b2_ref[...]
        h2 = jnp.maximum(h2, 0.0)
        # F.dropout (eval mode) is identity here.
        o = jnp.dot(h2.astype(w3_ref.dtype), w3_ref[...],
                    preferred_element_type=jnp.float32) + b3_ref[...]
        o_ref[...] = o.astype(o_ref.dtype)


def fc_head(x, w1, b1, w2, b2, w3, b3):
    """Fused fc1/relu/fc2/relu/fc3; weights stored as (in_features, out_features)."""
    B, F = x.shape
    H1 = w1.shape[1]
    H2 = w2.shape[1]
    C = w3.shape[1]

    F_lane = _round_up(F, 128)
    if F_lane <= _MAX_TK_FC:
        tk, F_pad = F_lane, F_lane
    else:
        tk = _MAX_TK_FC
        F_pad = _round_up(F, tk)
    n_k = F_pad // tk

    x_p = x.astype(jnp.bfloat16)
    w1_p = w1.astype(jnp.bfloat16)
    if F_pad != F:
        x_p = jnp.pad(x_p, ((0, 0), (0, F_pad - F)))
        w1_p = jnp.pad(w1_p, ((0, F_pad - F), (0, 0)))
    w2_b = w2.astype(jnp.bfloat16)
    w3_b = w3.astype(jnp.bfloat16)
    b1_2 = b1.reshape(1, H1).astype(jnp.float32)
    b2_2 = b2.reshape(1, H2).astype(jnp.float32)
    b3_2 = b3.reshape(1, C).astype(jnp.float32)

    in_specs = [
        pl.BlockSpec((B, tk), lambda k: (0, k)),
        pl.BlockSpec((tk, H1), lambda k: (k, 0)),
        pl.BlockSpec((1, H1), lambda k: (0, 0)),
        pl.BlockSpec((H1, H2), lambda k: (0, 0)),
        pl.BlockSpec((1, H2), lambda k: (0, 0)),
        pl.BlockSpec((H2, C), lambda k: (0, 0)),
        pl.BlockSpec((1, C), lambda k: (0, 0)),
    ]
    out_spec = pl.BlockSpec((B, C), lambda k: (0, 0))
    cp = pltpu.CompilerParams(dimension_semantics=("arbitrary",),
                              vmem_limit_bytes=_vmem_limit())
    out_shape = jax.ShapeDtypeStruct((B, C), jnp.float32)

    if n_k == 1:
        return pl.pallas_call(
            _fc_head_singlek_kernel, out_shape=out_shape, grid=(1,),
            in_specs=in_specs, out_specs=out_spec, compiler_params=cp,
        )(x_p, w1_p, b1_2, w2_b, b2_2, w3_b, b3_2)
    return pl.pallas_call(
        _fc_head_kernel, out_shape=out_shape, grid=(n_k,),
        in_specs=in_specs, out_specs=out_spec,
        scratch_shapes=[pltpu.VMEM((B, H1), jnp.float32)],
        compiler_params=cp,
    )(x_p, w1_p, b1_2, w2_b, b2_2, w3_b, b3_2)


# ---------------------------------------------------------------------------
# CNN3D forward (eval mode)
# ---------------------------------------------------------------------------
def cnn3d_forward(params, x_3d):
    p = params
    x = conv3d_bn_relu(x_3d, p["conv1_w"], p["conv1_b"],
                       p["bn1_gamma"], p["bn1_beta"],
                       p["bn1_mean"], p["bn1_var"], stride=(2, 2, 2))
    # Dropout3d: identity in eval mode.
    x = conv3d_bn_relu(x, p["conv2_w"], p["conv2_b"],
                       p["bn2_gamma"], p["bn2_beta"],
                       p["bn2_mean"], p["bn2_var"], stride=(2, 2, 2))
    # Dropout3d: identity in eval mode.
    B = x.shape[0]
    x = x.reshape(B, -1)   # NCDHW flatten order == torch x.view(x.size(0), -1)
    return fc_head(x, p["fc1_w"], p["fc1_b"], p["fc2_w"], p["fc2_b"],
                   p["fc3_w"], p["fc3_b"])


# ---------------------------------------------------------------------------
# Deterministic parameter construction + example run
# ---------------------------------------------------------------------------
def make_params(key, t_dim, img_x, img_y, fc_hidden1, fc_hidden2, num_classes):
    ch1, ch2 = 32, 48
    k1, k2 = (5, 5, 5), (3, 3, 3)
    s1, s2 = (2, 2, 2), (2, 2, 2)

    def out_size(sz, k, s):
        return tuple((sz[i] - (k[i] - 1) - 1) // s[i] + 1 for i in range(3))

    o1 = out_size((t_dim, img_x, img_y), k1, s1)
    o2 = out_size(o1, k2, s2)
    flat = ch2 * o2[0] * o2[1] * o2[2]

    keys = jax.random.split(key, 12)
    f32 = jnp.float32
    # Note: FC weights are stored pre-transposed as (in_features, out_features).
    params = {
        "conv1_w": 0.05 * jax.random.normal(keys[0], (ch1, 1) + k1, f32),
        "conv1_b": 0.01 * jax.random.normal(keys[1], (ch1,), f32),
        "bn1_gamma": 1.0 + 0.1 * jax.random.normal(keys[2], (ch1,), f32),
        "bn1_beta": 0.01 * jax.random.normal(keys[3], (ch1,), f32),
        "bn1_mean": jnp.zeros((ch1,), f32),
        "bn1_var": jnp.ones((ch1,), f32),
        "conv2_w": 0.05 * jax.random.normal(keys[4], (ch2, ch1) + k2, f32),
        "conv2_b": 0.01 * jax.random.normal(keys[5], (ch2,), f32),
        "bn2_gamma": 1.0 + 0.1 * jax.random.normal(keys[6], (ch2,), f32),
        "bn2_beta": 0.01 * jax.random.normal(keys[7], (ch2,), f32),
        "bn2_mean": jnp.zeros((ch2,), f32),
        "bn2_var": jnp.ones((ch2,), f32),
        "fc1_w": 0.05 * jax.random.normal(keys[8], (flat, fc_hidden1), f32),
        "fc1_b": jnp.zeros((fc_hidden1,), f32),
        "fc2_w": 0.05 * jax.random.normal(keys[9], (fc_hidden1, fc_hidden2), f32),
        "fc2_b": jnp.zeros((fc_hidden2,), f32),
        "fc3_w": 0.05 * jax.random.normal(keys[10], (fc_hidden2, num_classes), f32),
        "fc3_b": jnp.zeros((num_classes,), f32),
    }
    return params


if __name__ == "__main__":
    # Small shapes consistent with the module: (B, 1, t_dim, img_x, img_y)
    B, t_dim, img_x, img_y = 2, 16, 16, 16
    fc_hidden1, fc_hidden2, num_classes = 64, 32, 10

    key = jax.random.PRNGKey(0)
    k_in, k_par = jax.random.split(key)
    x_3d = jax.random.normal(k_in, (B, 1, t_dim, img_x, img_y), jnp.float32)

    params = make_params(k_par, t_dim, img_x, img_y,
                         fc_hidden1, fc_hidden2, num_classes)

    out = jax.jit(cnn3d_forward)(params, x_3d)
    out = jax.block_until_ready(out)
    assert out.shape == (B, num_classes), out.shape
    print("KERNEL_OK")
</pallas_src>

<mosaic_0001>
module attributes {stable_mosaic.version = 11 : i64} {
  func.func @_conv_batched_singlek_kernel(%arg0: i32, %arg1: memref<32x128xbf16, #tpu.memory_space<vmem>>, %arg2: memref<2x128x256xbf16, #tpu.memory_space<vmem>>, %arg3: memref<32x1xf32, #tpu.memory_space<vmem>>, %arg4: memref<2x32x256xbf16, #tpu.memory_space<vmem>>) attributes {dimension_semantics = [#tpu.dimension_semantics<arbitrary>], iteration_bounds = array<i64: 1>, scalar_prefetch = 0 : i64, scratch_operands = 0 : i64, tpu.core_type = #tpu.core_type<tc>, window_params = [{transform_indices = @transform_0, window_bounds = array<i64: 32, 128>}, {transform_indices = @transform_1, window_bounds = array<i64: 2, 128, 256>}, {pipeline_mode = #tpu.pipeline_mode<synchronous>, transform_indices = @transform_2, window_bounds = array<i64: 32, 1>}, {pipeline_mode = #tpu.pipeline_mode<synchronous>, transform_indices = @transform_3, window_bounds = array<i64: 2, 32, 256>}]} {
    %c0 = arith.constant 0 : index
    %c0_0 = arith.constant 0 : index
    %0 = vector.load %arg1[%c0, %c0_0] : memref<32x128xbf16, #tpu.memory_space<vmem>>, vector<32x128xbf16>
    %c0_1 = arith.constant 0 : index
    %c0_2 = arith.constant 0 : index
    %1 = vector.load %arg3[%c0_1, %c0_2] : memref<32x1xf32, #tpu.memory_space<vmem>>, vector<32x1xf32>
    %c0_3 = arith.constant 0 : index
    %c0_4 = arith.constant 0 : index
    %c0_5 = arith.constant 0 : index
    %2 = vector.load %arg2[%c0_3, %c0_4, %c0_5] : memref<2x128x256xbf16, #tpu.memory_space<vmem>>, vector<1x128x256xbf16>
    %3 = vector.shape_cast %2 : vector<1x128x256xbf16> to vector<128x256xbf16>
    %cst = arith.constant dense<0.000000e+00> : vector<32x256xf32>
    %4 = tpu.matmul %0, %3, %cst {dimension_numbers = #tpu.dot_dimension_numbers<[1], [0], [0], [1], [0, 0, 1, 1], [], []>} : vector<32x128xbf16>, vector<128x256xbf16>, vector<32x256xf32> -> vector<32x256xf32>
    %5 = vector.broadcast %1 : vector<32x1xf32> to vector<32x256xf32>
    %6 = arith.addf %4, %5 : vector<32x256xf32>
    %cst_6 = arith.constant 0.000000e+00 : f32
    %7 = vector.broadcast %cst_6 : f32 to vector<32x256xf32>
    %8 = arith.maximumf %6, %7 : vector<32x256xf32>
    %9 = arith.truncf %8 : vector<32x256xf32> to vector<32x256xbf16>
    %c0_7 = arith.constant 0 : index
    %c0_8 = arith.constant 0 : index
    %c0_9 = arith.constant 0 : index
    %10 = vector.load %arg4[%c0_7, %c0_8, %c0_9] : memref<2x32x256xbf16, #tpu.memory_space<vmem>>, vector<1x32x256xbf16>
    %11 = vector.shape_cast %10 : vector<1x32x256xbf16> to vector<32x256xbf16>
    %12 = vector.shape_cast %9 : vector<32x256xbf16> to vector<1x32x256xbf16>
    tpu.vector_store %arg4[%c0_7, %c0_8, %c0_9], %12 {strides = array<i32>} : memref<2x32x256xbf16, #tpu.memory_space<vmem>>, vector<1x32x256xbf16>,
    %c1 = arith.constant 1 : index
    %c0_10 = arith.constant 0 : index
    %c0_11 = arith.constant 0 : index
    %13 = vector.load %arg2[%c1, %c0_10, %c0_11] : memref<2x128x256xbf16, #tpu.memory_space<vmem>>, vector<1x128x256xbf16>
    %14 = vector.shape_cast %13 : vector<1x128x256xbf16> to vector<128x256xbf16>
    %cst_12 = arith.constant dense<0.000000e+00> : vector<32x256xf32>
    %15 = tpu.matmul %0, %14, %cst_12 {dimension_numbers = #tpu.dot_dimension_numbers<[1], [0], [0], [1], [0, 0, 1, 1], [], []>} : vector<32x128xbf16>, vector<128x256xbf16>, vector<32x256xf32> -> vector<32x256xf32>
    %16 = vector.broadcast %1 : vector<32x1xf32> to vector<32x256xf32>
    %17 = arith.addf %15, %16 : vector<32x256xf32>
    %cst_13 = arith.constant 0.000000e+00 : f32
    %18 = vector.broadcast %cst_13 : f32 to vector<32x256xf32>
    %19 = arith.maximumf %17, %18 : vector<32x256xf32>
    %20 = arith.truncf %19 : vector<32x256xf32> to vector<32x256xbf16>
    %c1_14 = arith.constant 1 : index
    %c0_15 = arith.constant 0 : index
    %c0_16 = arith.constant 0 : index
    %21 = vector.load %arg4[%c1_14, %c0_15, %c0_16] : memref<2x32x256xbf16, #tpu.memory_space<vmem>>, vector<1x32x256xbf16>
    %22 = vector.shape_cast %21 : vector<1x32x256xbf16> to vector<32x256xbf16>
    %23 = vector.shape_cast %20 : vector<32x256xbf16> to vector<1x32x256xbf16>
    tpu.vector_store %arg4[%c1_14, %c0_15, %c0_16], %23 {strides = array<i32>} : memref<2x32x256xbf16, #tpu.memory_space<vmem>>, vector<1x32x256xbf16>,
    return
  }
  func.func @transform_0(%arg0: i32) -> (i32, i32) {
    %c0_i32 = arith.constant 0 : i32
    %c0_i32_0 = arith.constant 0 : i32
    return %c0_i32, %arg0 : i32, i32
  }
  func.func @transform_1(%arg0: i32) -> (i32, i32, i32) {
    %c0_i32 = arith.constant 0 : i32
    %c0_i32_0 = arith.constant 0 : i32
    %c0_i32_1 = arith.constant 0 : i32
    return %c0_i32, %arg0, %c0_i32_0 : i32, i32, i32
  }
  func.func @transform_2(%arg0: i32) -> (i32, i32) {
    %c0_i32 = arith.constant 0 : i32
    %c0_i32_0 = arith.constant 0 : i32
    %c0_i32_1 = arith.constant 0 : i32
    return %c0_i32, %c0_i32_0 : i32, i32
  }
  func.func @transform_3(%arg0: i32) -> (i32, i32, i32) {
    %c0_i32 = arith.constant 0 : i32
    %c0_i32_0 = arith.constant 0 : i32
    %c0_i32_1 = arith.constant 0 : i32
    %c0_i32_2 = arith.constant 0 : i32
    return %c0_i32, %c0_i32_0, %c0_i32_1 : i32, i32, i32
  }
}

module attributes {stable_mosaic.version = 11 : i64} {
  func.func @_conv_batched_singlek_kernel(%arg0: i32, %arg1: memref<48x896xbf16, #tpu.memory_space<vmem>>, %arg2: memref<2x896x128xbf16, #tpu.memory_space<vmem>>, %arg3: memref<48x1xf32, #tpu.memory_space<vmem>>, %arg4: memref<2x48x128xbf16, #tpu.memory_space<vmem>>) attributes {dimension_semantics = [#tpu.dimension_semantics<arbitrary>], iteration_bounds = array<i64: 1>, scalar_prefetch = 0 : i64, scratch_operands = 0 : i64, tpu.core_type = #tpu.core_type<tc>, window_params = [{transform_indices = @transform_0, window_bounds = array<i64: 48, 896>}, {transform_indices = @transform_1, window_bounds = array<i64: 2, 896, 128>}, {pipeline_mode = #tpu.pipeline_mode<synchronous>, transform_indices = @transform_2, window_bounds = array<i64: 48, 1>}, {pipeline_mode = #tpu.pipeline_mode<synchronous>, transform_indices = @transform_3, window_bounds = array<i64: 2, 48, 128>}]} {
    %c0 = arith.constant 0 : index
    %c0_0 = arith.constant 0 : index
    %0 = vector.load %arg1[%c0, %c0_0] : memref<48x896xbf16, #tpu.memory_space<vmem>>, vector<48x896xbf16>
    %c0_1 = arith.constant 0 : index
    %c0_2 = arith.constant 0 : index
    %1 = vector.load %arg3[%c0_1, %c0_2] : memref<48x1xf32, #tpu.memory_space<vmem>>, vector<48x1xf32>
    %c0_3 = arith.constant 0 : index
    %c0_4 = arith.constant 0 : index
    %c0_5 = arith.constant 0 : index
    %2 = vector.load %arg2[%c0_3, %c0_4, %c0_5] : memref<2x896x128xbf16, #tpu.memory_space<vmem>>, vector<1x896x128xbf16>
    %3 = vector.shape_cast %2 : vector<1x896x128xbf16> to vector<896x128xbf16>
    %cst = arith.constant dense<0.000000e+00> : vector<48x128xf32>
    %4 = tpu.matmul %0, %3, %cst {dimension_numbers = #tpu.dot_dimension_numbers<[1], [0], [0], [1], [0, 0, 1, 1], [], []>} : vector<48x896xbf16>, vector<896x128xbf16>, vector<48x128xf32> -> vector<48x128xf32>
    %5 = vector.broadcast %1 : vector<48x1xf32> to vector<48x128xf32>
    %6 = arith.addf %4, %5 : vector<48x128xf32>
    %cst_6 = arith.constant 0.000000e+00 : f32
    %7 = vector.broadcast %cst_6 : f32 to vector<48x128xf32>
    %8 = arith.maximumf %6, %7 : vector<48x128xf32>
    %9 = arith.truncf %8 : vector<48x128xf32> to vector<48x128xbf16>
    %c0_7 = arith.constant 0 : index
    %c0_8 = arith.constant 0 : index
    %c0_9 = arith.constant 0 : index
    %10 = vector.load %arg4[%c0_7, %c0_8, %c0_9] : memref<2x48x128xbf16, #tpu.memory_space<vmem>>, vector<1x48x128xbf16>
    %11 = vector.shape_cast %10 : vector<1x48x128xbf16> to vector<48x128xbf16>
    %12 = vector.shape_cast %9 : vector<48x128xbf16> to vector<1x48x128xbf16>
    tpu.vector_store %arg4[%c0_7, %c0_8, %c0_9], %12 {strides = array<i32>} : memref<2x48x128xbf16, #tpu.memory_space<vmem>>, vector<1x48x128xbf16>,
    %c1 = arith.constant 1 : index
    %c0_10 = arith.constant 0 : index
    %c0_11 = arith.constant 0 : index
    %13 = vector.load %arg2[%c1, %c0_10, %c0_11] : memref<2x896x128xbf16, #tpu.memory_space<vmem>>, vector<1x896x128xbf16>
    %14 = vector.shape_cast %13 : vector<1x896x128xbf16> to vector<896x128xbf16>
    %cst_12 = arith.constant dense<0.000000e+00> : vector<48x128xf32>
    %15 = tpu.matmul %0, %14, %cst_12 {dimension_numbers = #tpu.dot_dimension_numbers<[1], [0], [0], [1], [0, 0, 1, 1], [], []>} : vector<48x896xbf16>, vector<896x128xbf16>, vector<48x128xf32> -> vector<48x128xf32>
    %16 = vector.broadcast %1 : vector<48x1xf32> to vector<48x128xf32>
    %17 = arith.addf %15, %16 : vector<48x128xf32>
    %cst_13 = arith.constant 0.000000e+00 : f32
    %18 = vector.broadcast %cst_13 : f32 to vector<48x128xf32>
    %19 = arith.maximumf %17, %18 : vector<48x128xf32>
    %20 = arith.truncf %19 : vector<48x128xf32> to vector<48x128xbf16>
    %c1_14 = arith.constant 1 : index
    %c0_15 = arith.constant 0 : index
    %c0_16 = arith.constant 0 : index
    %21 = vector.load %arg4[%c1_14, %c0_15, %c0_16] : memref<2x48x128xbf16, #tpu.memory_space<vmem>>, vector<1x48x128xbf16>
    %22 = vector.shape_cast %21 : vector<1x48x128xbf16> to vector<48x128xbf16>
    %23 = vector.shape_cast %20 : vector<48x128xbf16> to vector<1x48x128xbf16>
    tpu.vector_store %arg4[%c1_14, %c0_15, %c0_16], %23 {strides = array<i32>} : memref<2x48x128xbf16, #tpu.memory_space<vmem>>, vector<1x48x128xbf16>,
    return
  }
  func.func @transform_0(%arg0: i32) -> (i32, i32) {
    %c0_i32 = arith.constant 0 : i32
    %c0_i32_0 = arith.constant 0 : i32
    return %c0_i32, %arg0 : i32, i32
  }
  func.func @transform_1(%arg0: i32) -> (i32, i32, i32) {
    %c0_i32 = arith.constant 0 : i32
    %c0_i32_0 = arith.constant 0 : i32
    %c0_i32_1 = arith.constant 0 : i32
    return %c0_i32, %arg0, %c0_i32_0 : i32, i32, i32
  }
  func.func @transform_2(%arg0: i32) -> (i32, i32) {
    %c0_i32 = arith.constant 0 : i32
    %c0_i32_0 = arith.constant 0 : i32
    %c0_i32_1 = arith.constant 0 : i32
    return %c0_i32, %c0_i32_0 : i32, i32
  }
  func.func @transform_3(%arg0: i32) -> (i32, i32, i32) {
    %c0_i32 = arith.constant 0 : i32
    %c0_i32_0 = arith.constant 0 : i32
    %c0_i32_1 = arith.constant 0 : i32
    %c0_i32_2 = arith.constant 0 : i32
    return %c0_i32, %c0_i32_0, %c0_i32_1 : i32, i32, i32
  }
}

module attributes {stable_mosaic.version = 11 : i64} {
  func.func @_fc_head_singlek_kernel(%arg0: i32, %arg1: memref<2x384xbf16, #tpu.memory_space<vmem>>, %arg2: memref<384x64xbf16, #tpu.memory_space<vmem>>, %arg3: memref<1x64xf32, #tpu.memory_space<vmem>>, %arg4: memref<64x32xbf16, #tpu.memory_space<vmem>>, %arg5: memref<1x32xf32, #tpu.memory_space<vmem>>, %arg6: memref<32x10xbf16, #tpu.memory_space<vmem>>, %arg7: memref<1x10xf32, #tpu.memory_space<vmem>>, %arg8: memref<2x10xf32, #tpu.memory_space<vmem>>) attributes {dimension_semantics = [#tpu.dimension_semantics<arbitrary>], iteration_bounds = array<i64: 1>, scalar_prefetch = 0 : i64, scratch_operands = 0 : i64, tpu.core_type = #tpu.core_type<tc>, window_params = [{transform_indices = @transform_0, window_bounds = array<i64: 2, 384>}, {transform_indices = @transform_1, window_bounds = array<i64: 384, 64>}, {pipeline_mode = #tpu.pipeline_mode<synchronous>, transform_indices = @transform_2, window_bounds = array<i64: 1, 64>}, {pipeline_mode = #tpu.pipeline_mode<synchronous>, transform_indices = @transform_3, window_bounds = array<i64: 64, 32>}, {pipeline_mode = #tpu.pipeline_mode<synchronous>, transform_indices = @transform_4, window_bounds = array<i64: 1, 32>}, {pipeline_mode = #tpu.pipeline_mode<synchronous>, transform_indices = @transform_5, window_bounds = array<i64: 32, 10>}, {pipeline_mode = #tpu.pipeline_mode<synchronous>, transform_indices = @transform_6, window_bounds = array<i64: 1, 10>}, {pipeline_mode = #tpu.pipeline_mode<synchronous>, transform_indices = @transform_7, window_bounds = array<i64: 2, 10>}]} {
    %c0 = arith.constant 0 : index
    %c0_0 = arith.constant 0 : index
    %0 = vector.load %arg1[%c0, %c0_0] : memref<2x384xbf16, #tpu.memory_space<vmem>>, vector<2x384xbf16>
    %c0_1 = arith.constant 0 : index
    %c0_2 = arith.constant 0 : index
    %1 = vector.load %arg2[%c0_1, %c0_2] : memref<384x64xbf16, #tpu.memory_space<vmem>>, vector<384x64xbf16>
    %cst = arith.constant dense<0.000000e+00> : vector<2x64xf32>
    %2 = tpu.matmul %0, %1, %cst {dimension_numbers = #tpu.dot_dimension_numbers<[1], [0], [0], [1], [0, 0, 1, 1], [], []>} : vector<2x384xbf16>, vector<384x64xbf16>, vector<2x64xf32> -> vector<2x64xf32>
    %c0_3 = arith.constant 0 : index
    %c0_4 = arith.constant 0 : index
    %3 = vector.load %arg3[%c0_3, %c0_4] : memref<1x64xf32, #tpu.memory_space<vmem>>, vector<1x64xf32>
    %4 = vector.broadcast %3 : vector<1x64xf32> to vector<2x64xf32>
    %5 = arith.addf %2, %4 : vector<2x64xf32>
    %cst_5 = arith.constant 0.000000e+00 : f32
    %6 = vector.broadcast %cst_5 : f32 to vector<2x64xf32>
    %7 = arith.maximumf %5, %6 : vector<2x64xf32>
    %8 = arith.truncf %7 : vector<2x64xf32> to vector<2x64xbf16>
    %c0_6 = arith.constant 0 : index
    %c0_7 = arith.constant 0 : index
    %9 = vector.load %arg4[%c0_6, %c0_7] : memref<64x32xbf16, #tpu.memory_space<vmem>>, vector<64x32xbf16>
    %cst_8 = arith.constant dense<0.000000e+00> : vector<2x32xf32>
    %10 = tpu.matmul %8, %9, %cst_8 {dimension_numbers = #tpu.dot_dimension_numbers<[1], [0], [0], [1], [0, 0, 1, 1], [], []>} : vector<2x64xbf16>, vector<64x32xbf16>, vector<2x32xf32> -> vector<2x32xf32>
    %c0_9 = arith.constant 0 : index
    %c0_10 = arith.constant 0 : index
    %11 = vector.load %arg5[%c0_9, %c0_10] : memref<1x32xf32, #tpu.memory_space<vmem>>, vector<1x32xf32>
    %12 = vector.broadcast %11 : vector<1x32xf32> to vector<2x32xf32>
    %13 = arith.addf %10, %12 : vector<2x32xf32>
    %cst_11 = arith.constant 0.000000e+00 : f32
    %14 = vector.broadcast %cst_11 : f32 to vector<2x32xf32>
    %15 = arith.maximumf %13, %14 : vector<2x32xf32>
    %16 = arith.truncf %15 : vector<2x32xf32> to vector<2x32xbf16>
    %c0_12 = arith.constant 0 : index
    %c0_13 = arith.constant 0 : index
    %17 = vector.load %arg6[%c0_12, %c0_13] : memref<32x10xbf16, #tpu.memory_space<vmem>>, vector<32x10xbf16>
    %cst_14 = arith.constant dense<0.000000e+00> : vector<2x10xf32>
    %18 = tpu.matmul %16, %17, %cst_14 {dimension_numbers = #tpu.dot_dimension_numbers<[1], [0], [0], [1], [0, 0, 1, 1], [], []>} : vector<2x32xbf16>, vector<32x10xbf16>, vector<2x10xf32> -> vector<2x10xf32>
    %c0_15 = arith.constant 0 : index
    %c0_16 = arith.constant 0 : index
    %19 = vector.load %arg7[%c0_15, %c0_16] : memref<1x10xf32, #tpu.memory_space<vmem>>, vector<1x10xf32>
    %20 = vector.broadcast %19 : vector<1x10xf32> to vector<2x10xf32>
    %21 = arith.addf %18, %20 : vector<2x10xf32>
    %c0_17 = arith.constant 0 : index
    %c0_18 = arith.constant 0 : index
    %22 = vector.load %arg8[%c0_17, %c0_18] : memref<2x10xf32, #tpu.memory_space<vmem>>, vector<2x10xf32>
    tpu.vector_store %arg8[%c0_17, %c0_18], %21 {strides = array<i32>} : memref<2x10xf32, #tpu.memory_space<vmem>>, vector<2x10xf32>,
    return
  }
  func.func @transform_0(%arg0: i32) -> (i32, i32) {
    %c0_i32 = arith.constant 0 : i32
    %c0_i32_0 = arith.constant 0 : i32
    return %c0_i32, %arg0 : i32, i32
  }
  func.func @transform_1(%arg0: i32) -> (i32, i32) {
    %c0_i32 = arith.constant 0 : i32
    %c0_i32_0 = arith.constant 0 : i32
    return %arg0, %c0_i32 : i32, i32
  }
  func.func @transform_2(%arg0: i32) -> (i32, i32) {
    %c0_i32 = arith.constant 0 : i32
    %c0_i32_0 = arith.constant 0 : i32
    %c0_i32_1 = arith.constant 0 : i32
    return %c0_i32, %c0_i32_0 : i32, i32
  }
  func.func @transform_3(%arg0: i32) -> (i32, i32) {
    %c0_i32 = arith.constant 0 : i32
    %c0_i32_0 = arith.constant 0 : i32
    %c0_i32_1 = arith.constant 0 : i32
    return %c0_i32, %c0_i32_0 : i32, i32
  }
  func.func @transform_4(%arg0: i32) -> (i32, i32) {
    %c0_i32 = arith.constant 0 : i32
    %c0_i32_0 = arith.constant 0 : i32
    %c0_i32_1 = arith.constant 0 : i32
    return %c0_i32, %c0_i32_0 : i32, i32
  }
  func.func @transform_5(%arg0: i32) -> (i32, i32) {
    %c0_i32 = arith.constant 0 : i32
    %c0_i32_0 = arith.constant 0 : i32
    %c0_i32_1 = arith.constant 0 : i32
    return %c0_i32, %c0_i32_0 : i32, i32
  }
  func.func @transform_6(%arg0: i32) -> (i32, i32) {
    %c0_i32 = arith.constant 0 : i32
    %c0_i32_0 = arith.constant 0 : i32
    %c0_i32_1 = arith.constant 0 : i32
    return %c0_i32, %c0_i32_0 : i32, i32
  }
  func.func @transform_7(%arg0: i32) -> (i32, i32) {
    %c0_i32 = arith.constant 0 : i32
    %c0_i32_0 = arith.constant 0 : i32
    %c0_i32_1 = arith.constant 0 : i32
    return %c0_i32, %c0_i32_0 : i32, i32
  }
}

</mosaic_0001>

<bundles_post_ra>
// kernel: cnn3d_forward.3
= control target key start
LH: loop header
LB: loop body
LE: loop exit
PB: predicated region body
PF: predicated region fallthrough
CT: control target
= control target key end

     0   :  { %v554_v1 = vmov 0   ;;  %s719_s1 = inlined_call_operand.vmem [shape: bf16[2,128,256], index: 1, kind: input, shape index: {}]   ;;  %s720_s0 = inlined_call_operand.vmem [shape: bf16[32,128], index: 0, kind: input, shape index: {}]   ;;  %s721_s2 = inlined_call_operand.vmem [shape: f32[32,1], index: 2, kind: input, shape index: {}]   ;;  %s722_s3 = inlined_call_operand.vmem [shape: bf16[2,32,256], index: 3, kind: output, shape index: {}]  }
   0x1   :  { %v504_v0 = vld [vmem:[%s719_s1 + $0x4] ss:$8 sps:$4 sm:$0xff]   ;;  %183 = vmatprep.mubr.bf16.mxu0 %v554_v1  ;;  %369 = vmatprep.mubr.bf16.mxu1 %v554_v1  ;;  %v508_v3 = vld [vmem:[%s719_s1] ss:$8 sps:$4 sm:$0xff]   ;;  %v510_v5 = vld [vmem:[%s719_s1 + $0x14] ss:$8 sps:$4 sm:$0xff]  }
   0x2   :  { %v506_v2 = vld [vmem:[%s719_s1 + $0x84] ss:$8 sps:$4 sm:$0xff]   ;;  %502 = vset.pattern.permute.xlu0 %v554_v1  ;;  %503 = vset.pattern.permute.xlu1 %v554_v1  ;;  %v509_v4 = vld [vmem:[%s719_s1 + $0x80] ss:$8 sps:$4 sm:$0xff]   ;;  %v512_v6 = vld [vmem:[%s719_s1 + $0x94] ss:$8 sps:$4 sm:$0xff]  }
   0x3   :  { %151 = vmatprep.subr.bf16.mxu0 %v504_v0  ;;  %337 = vmatprep.subr.bf16.mxu1 %v506_v2  ;;  %v514_v7 = vld [vmem:[%s719_s1 + $0x10] ss:$8 sps:$4 sm:$0xff]   ;;  %v516_v9 = vld [vmem:[%s719_s1 + $0x24] ss:$8 sps:$4 sm:$0xff]   ;;  %v520_v11 = vld [vmem:[%s719_s1 + $0x20] ss:$8 sps:$4 sm:$0xff]  }
   0x4   :  { %152 = vmatpush1.bf16.msra.mxu0 %v508_v3  ;;  %338 = vmatpush1.bf16.msra.mxu1 %v509_v4  ;;  %v515_v8 = vld [vmem:[%s719_s1 + $0x90] ss:$8 sps:$4 sm:$0xff]   ;;  %v518_v10 = vld [vmem:[%s719_s1 + $0xa4] ss:$8 sps:$4 sm:$0xff]   ;;  %v521_v12 = vld [vmem:[%s719_s1 + $0xa0] ss:$8 sps:$4 sm:$0xff]  }
   0x5   :  { %153 = vmatprep.subr.bf16.mxu0 %v510_v5  ;;  %339 = vmatprep.subr.bf16.mxu1 %v512_v6  ;;  %v522_v13 = vld [vmem:[%s719_s1 + $0x34] ss:$8 sps:$4 sm:$0xff]   ;;  %v526_v15 = vld [vmem:[%s719_s1 + $0x30] ss:$8 sps:$4 sm:$0xff]   ;;  %v528_v17 = vld [vmem:[%s719_s1 + $0x44] ss:$8 sps:$4 sm:$0xff]  }
   0x6   :  { %v524_v14 = vld [vmem:[%s719_s1 + $0xb4] ss:$8 sps:$4 sm:$0xff]   ;;  %v527_v16 = vld [vmem:[%s719_s1 + $0xb0] ss:$8 sps:$4 sm:$0xff]   ;;  %v530_v18 = vld [vmem:[%s719_s1 + $0xc4] ss:$8 sps:$4 sm:$0xff]  }
   0x7   :  { %v532_v19 = vld [vmem:[%s719_s1 + $0x40] ss:$8 sps:$4 sm:$0xff]   ;;  %v534_v21 = vld [vmem:[%s719_s1 + $0x54] ss:$8 sps:$4 sm:$0xff]   ;;  %v538_v23 = vld [vmem:[%s719_s1 + $0x50] ss:$8 sps:$4 sm:$0xff]  }
   0x8   :  { %154 = vmatpush1.bf16.msra.mxu0 %v514_v7  ;;  %340 = vmatpush1.bf16.msra.mxu1 %v515_v8  ;;  %v533_v20 = vld [vmem:[%s719_s1 + $0xc0] ss:$8 sps:$4 sm:$0xff]   ;;  %v536_v22 = vld [vmem:[%s719_s1 + $0xd4] ss:$8 sps:$4 sm:$0xff]   ;;  %v539_v24 = vld [vmem:[%s719_s1 + $0xd0] ss:$8 sps:$4 sm:$0xff]  }
   0x9   :  { %155 = vmatprep.subr.bf16.mxu0 %v516_v9  ;;  %341 = vmatprep.subr.bf16.mxu1 %v518_v10  ;;  %v540_v25 = vld [vmem:[%s719_s1 + $0x64] ss:$8 sps:$4 sm:$0xff]   ;;  %v544_v28 = vld [vmem:[%s719_s1 + $0x60] ss:$8 sps:$4 sm:$0xff]   ;;  %v21_v30 = vld [vmem:[%s721_s2 + $0x10] sm:$0xff] }
   0xa   :  { %v542_v26 = vld [vmem:[%s719_s1 + $0xe4] ss:$8 sps:$4 sm:$0xff]   ;;  %v545_v29 = vld [vmem:[%s719_s1 + $0xe0] ss:$8 sps:$4 sm:$0xff]   ;;  %v546_v31 = vld [vmem:[%s719_s1 + $0x74] ss:$8 sps:$4 sm:$0xff]   ;;  %51 = vperm.xlu1 %503, %v21_v30  }
   0xb   :  { %v19_v27 = vld [vmem:[%s721_s2] sm:$0xff]  ;;  %v548_v32 = vld [vmem:[%s719_s1 + $0xf4] ss:$8 sps:$4 sm:$0xff]   ;;  %v20_v33 = vld [vmem:[%s721_s2 + $0x8] sm:$0xff] }
   0xc   :  { %156 = vmatpush1.bf16.msra.mxu0 %v520_v11  ;;  %342 = vmatpush1.bf16.msra.mxu1 %v521_v12  ;;  %v22_v34 = vld [vmem:[%s721_s2 + $0x18] sm:$0xff]  ;;  %v552_v37 = vld [vmem:[%s720_s0] sm:$0xff]   ;;  %v553_v38 = vld [vmem:[%s720_s0 + $0x8] sm:$0xff]  }
   0xd   :  { %157 = vmatprep.subr.bf16.mxu0 %v522_v13  ;;  %343 = vmatprep.subr.bf16.mxu1 %v524_v14  ;;  %v550_v35 = vld [vmem:[%s719_s1 + $0x70] ss:$8 sps:$4 sm:$0xff]  }
   0xe   :  { %41 = vperm.xlu0 %502, %v19_v27   ;;  %v551_v36 = vld [vmem:[%s719_s1 + $0xf0] ss:$8 sps:$4 sm:$0xff]   ;;  %56 = vperm.xlu1 %503, %v22_v34  }
  0x10   :  { %158 = vmatpush1.bf16.msra.mxu0 %v526_v15  ;;  %344 = vmatpush1.bf16.msra.mxu1 %v527_v16 }
  0x11   :  { %159 = vmatprep.subr.bf16.mxu0 %v528_v17  ;;  %345 = vmatprep.subr.bf16.mxu1 %v530_v18 }
  0x12   :  { %46 = vperm.xlu0 %502, %v20_v33  }
  0x14   :  { %160 = vmatpush1.bf16.msra.mxu0 %v532_v19  ;;  %346 = vmatpush1.bf16.msra.mxu1 %v533_v20 }
  0x15   :  { %161 = vmatprep.subr.bf16.mxu0 %v534_v21  ;;  %347 = vmatprep.subr.bf16.mxu1 %v536_v22 }
  0x18   :  { %162 = vmatpush1.bf16.msra.mxu0 %v538_v23  ;;  %348 = vmatpush1.bf16.msra.mxu1 %v539_v24 }
  0x19   :  { %163 = vmatprep.subr.bf16.mxu0 %v540_v25  ;;  %349 = vmatprep.subr.bf16.mxu1 %v542_v26 }
  0x1c   :  { %164 = vmatpush1.bf16.msra.mxu0 %v544_v28  ;;  %350 = vmatpush1.bf16.msra.mxu1 %v545_v29 }
  0x1d   :  { %165 = vmatprep.subr.bf16.mxu0 %v546_v31  ;;  %351 = vmatprep.subr.bf16.mxu1 %v548_v32 }
  0x20   :  { %166 = vmatpush1.bf16.msra.mxu0 %v550_v35  ;;  %352 = vmatpush1.bf16.msra.mxu1 %v551_v36 }
  0x23   :  { %184 = vmatmul.mubr.bf16.vlgmr.msra.gmra.mrb[0].mxu0 %v552_v37  ;;  %370 = vmatmul.mubr.bf16.vlgmr.msra.gmra.mrb[0].mxu1 %v552_v37 }
  0x24   :  { %193 = vmatprep.mubr.bf16.mxu0 %v554_v1  ;;  %379 = vmatprep.mubr.bf16.mxu1 %v554_v1 }
  0x2b   :  { %194 = vmatmul.mubr.bf16.gmra.mrb[4].mxu0 %v553_v38  ;;  %380 = vmatmul.mubr.bf16.gmra.mrb[4].mxu1 %v553_v38 }
  0x89   :  { %v52_v41 = vpop.permute.xlu1 %51 }
  0x8d   :  { %v42_v39 = vpop.permute.xlu0 %41  ;;  %v57_v4 = vpop.permute.xlu1 %56 }
  0x91   :  { %v47_v40 = vpop.permute.xlu0 %46 }
  0xf6   :  { %v185_v42 = vpop.f32.mrb[0].mxu0  ;;  %v371_v43 = vpop.f32.mrb[0].mxu1 }
  0xf7   :  { %v186_v44 = vadd.f32 %v185_v42, %v42_v39  ;;  %v372_v45 = vadd.f32 %v371_v43, %v42_v39  ;;  %v187_v46 = vpop.f32.mrb[1].mxu0  ;;  %v373_v47 = vpop.f32.mrb[1].mxu1 }
  0xf8   :  { %v188_v48 = vadd.f32 %v187_v46, %v42_v39  ;;  %v374_v49 = vadd.f32 %v373_v47, %v42_v39  ;;  %v189_v50 = vpop.f32.mrb[2].mxu0  ;;  %v375_v51 = vpop.f32.mrb[2].mxu1 }
  0xf9   :  { %v204_v52 = vmax.f32 %v186_v44, 0.0  ;;  %v390_v53 = vmax.f32 %v372_v45, 0.0  ;;  %v190_v54 = vadd.f32 %v189_v50, %v47_v40  ;;  %v376_v55 = vadd.f32 %v375_v51, %v47_v40  ;;  %v191_v56 = vpop.f32.mrb[3].mxu0  ;;  %v377_v57 = vpop.f32.mrb[3].mxu1 }
  0xfa   :  { %v205_v58 = vmax.f32 %v188_v48, 0.0  ;;  %v391_v59 = vmax.f32 %v374_v49, 0.0  ;;  %v192_v60 = vadd.f32 %v191_v56, %v47_v40  ;;  %v378_v61 = vadd.f32 %v377_v57, %v47_v40 }
  0xfb   :  { %v206_v62 = vmax.f32 %v190_v54, 0.0  ;;  %v392_v63 = vmax.f32 %v376_v55, 0.0 }
  0xfc   :  { %v493_v0 = vpack.c.bf16 %v205_v58, %v204_v52  ;;  %v497_v1 = vpack.c.bf16 %v391_v59, %v390_v53  ;;  %v207_v2 = vmax.f32 %v192_v60, 0.0  ;;  %v393_v3 = vmax.f32 %v378_v61, 0.0 }
  0xfe   :  { %236 = vst [vmem:[%s722_s3] sm:$0xff] %v493_v0  ;;  %489 = vst [vmem:[%s722_s3 + $0x20] sm:$0xff] %v497_v1  ;;  %v494_v5 = vpack.c.bf16 %v207_v2, %v206_v62  ;;  %v498_v6 = vpack.c.bf16 %v393_v3, %v392_v63  ;;  %v195_v7 = vpop.f32.mrb[4].mxu0  ;;  %v381_v8 = vpop.f32.mrb[4].mxu1 }
  0xff   :  { %v196_v9 = vadd.f32 %v195_v7, %v52_v41  ;;  %v382_v10 = vadd.f32 %v381_v8, %v52_v41  ;;  %v197_v11 = vpop.f32.mrb[5].mxu0  ;;  %v383_v12 = vpop.f32.mrb[5].mxu1 }
 0x100   :  { %237 = vst [vmem:[%s722_s3 + $0x8] sm:$0xff] %v494_v5  ;;  %490 = vst [vmem:[%s722_s3 + $0x28] sm:$0xff] %v498_v6  ;;  %v198_v13 = vadd.f32 %v197_v11, %v52_v41  ;;  %v384_v14 = vadd.f32 %v383_v12, %v52_v41  ;;  %v199_v15 = vpop.f32.mrb[6].mxu0  ;;  %v385_v16 = vpop.f32.mrb[6].mxu1 }
 0x101   :  { %v208_v17 = vmax.f32 %v196_v9, 0.0  ;;  %v394_v18 = vmax.f32 %v382_v10, 0.0  ;;  %v200_v19 = vadd.f32 %v199_v15, %v57_v4  ;;  %v386_v20 = vadd.f32 %v385_v16, %v57_v4  ;;  %v201_v21 = vpop.f32.mrb[7].mxu0  ;;  %v387_v22 = vpop.f32.mrb[7].mxu1 }
 0x102   :  { %v209_v23 = vmax.f32 %v198_v13, 0.0  ;;  %v395_v24 = vmax.f32 %v384_v14, 0.0  ;;  %v202_v25 = vadd.f32 %v201_v21, %v57_v4  ;;  %v388_v26 = vadd.f32 %v387_v22, %v57_v4 }
 0x103   :  { %v210_v27 = vmax.f32 %v200_v19, 0.0  ;;  %v396_v28 = vmax.f32 %v386_v20, 0.0 }
 0x104   :  { %v495_v29 = vpack.c.bf16 %v209_v23, %v208_v17  ;;  %v499_v30 = vpack.c.bf16 %v395_v24, %v394_v18  ;;  %v211_v31 = vmax.f32 %v202_v25, 0.0  ;;  %v397_v32 = vmax.f32 %v388_v26, 0.0 }
 0x106   :  { %238 = vst [vmem:[%s722_s3 + $0x10] sm:$0xff] %v495_v29  ;;  %491 = vst [vmem:[%s722_s3 + $0x30] sm:$0xff] %v499_v30  ;;  %v496_v33 = vpack.c.bf16 %v211_v31, %v210_v27  ;;  %v500_v34 = vpack.c.bf16 %v397_v32, %v396_v28 }
 0x108   :  { %239 = vst [vmem:[%s722_s3 + $0x18] sm:$0xff] %v496_v33  ;;  %492 = vst [vmem:[%s722_s3 + $0x38] sm:$0xff] %v500_v34 }

// kernel: cnn3d_forward.5
= control target key start
LH: loop header
LB: loop body
LE: loop exit
PB: predicated region body
PF: predicated region fallthrough
CT: control target
= control target key end

     0   :  { %v678_v2 = vmov 0.0   ;;  %vm679_vm0 = vmmov 0   ;;  %v96_v20 = vlaneseq  ;;  %v680_v25 = vmov 1966171168   ;;  %s856_s0 = inlined_call_operand.vmem [shape: bf16[2,384], index: 0, kind: input, shape index: {}]   ;;  %s857_s1 = inlined_call_operand.vmem [shape: bf16[384,64], index: 1, kind: input, shape index: {}]   ;;  %s858_s2 = inlined_call_operand.vmem [shape: f32[1,64], index: 2, kind: input, shape index: {}]   ;;  %s859_s3 = inlined_call_operand.vmem [shape: bf16[64,32], index: 3, kind: input, shape index: {}]   ;;  %s860_s4 = inlined_call_operand.vmem [shape: f32[1,32], index: 4, kind: input, shape index: {}]   ;;  %s861_s5 = inlined_call_operand.vmem [shape: bf16[32,10], index: 5, kind: input, shape index: {}]   ;;  %s862_s6 = inlined_call_operand.vmem [shape: f32[1,10], index: 6, kind: input, shape index: {}]   ;;  %s863_s7 = inlined_call_operand.hbm [shape: f32[2,10], index: 7, kind: output, shape index: {}]  }
   0x1   :  { %v624_v0 = vld [vmem:[%s857_s1 + $0x40] sm:$0xff]   ;;  %580 = vmatprep.subr.bf16.mxu1 %v678_v2  ;;  %596 = vmatprep.mubr.msk.bf16.mxu1 %vm679_vm0, %v678_v2  ;;  %v627_v4 = vld [vmem:[%s857_s1 + $0x48] sm:$0xff]   ;;  %v630_v7 = vld [vmem:[%s857_s1 + $0x50] sm:$0xff]   ;;  %v94_v26 = vunpack.c.l.s4 %v680_v25 }
   0x2   :  { %v625_v1 = vld [vmem:[%s857_s1] sm:$0xff]   ;;  %541 = vmatprep.subr.bf16.mxu0 %v624_v0  ;;  %v628_v5 = vld [vmem:[%s857_s1 + $0x8] sm:$0xff]   ;;  %v631_v8 = vld [vmem:[%s857_s1 + $0x10] sm:$0xff]   ;;  %v97_v27 = vshrl.u32 %v96_v20, 7 }
   0x3   :  { %v626_v3 = vld [vmem:[%s857_s1 + $0x80] sm:$0xff]   ;;  %542 = vmatpush3.bf16.msra.mxu0 %v625_v1  ;;  %v629_v6 = vld [vmem:[%s857_s1 + $0x88] sm:$0xff]   ;;  %v632_v9 = vld [vmem:[%s857_s1 + $0x90] sm:$0xff]   ;;  %v95_v30 = vunpack.c.0.s8 %v94_v26 }
   0x4   :  { %581 = vmatpush3.bf16.msra.mxu1 %v626_v3  ;;  %543 = vmatprep.subr.bf16.mxu0 %v627_v4  ;;  %v633_v10 = vld [vmem:[%s857_s1 + $0x58] sm:$0xff]   ;;  %v636_v13 = vld [vmem:[%s857_s1 + $0x60] sm:$0xff]   ;;  %v639_v16 = vld [vmem:[%s857_s1 + $0x68] sm:$0xff]  }
   0x5   :  { %582 = vmatprep.subr.bf16.mxu1 %v678_v2  ;;  %v634_v11 = vld [vmem:[%s857_s1 + $0x18] sm:$0xff]   ;;  %v637_v14 = vld [vmem:[%s857_s1 + $0x20] sm:$0xff]   ;;  %v640_v17 = vld [vmem:[%s857_s1 + $0x28] sm:$0xff]   ;;  %v98_v32 = vsub.s32 %v95_v30, %v97_v27 }
   0x6   :  { %v635_v12 = vld [vmem:[%s857_s1 + $0x98] sm:$0xff]   ;;  %v638_v15 = vld [vmem:[%s857_s1 + $0xa0] sm:$0xff]   ;;  %v641_v18 = vld [vmem:[%s857_s1 + $0xa8] sm:$0xff]  }
   0x7   :  { %544 = vmatpush3.bf16.msra.mxu0 %v628_v5  ;;  %v642_v19 = vld [vmem:[%s857_s1 + $0x70] sm:$0xff]   ;;  %v506_v23 = vld.sshfl [vmem:[%s856_s0] sm:$0x13 pattern:$0x75316420]  ;;  %v645_v24 = vld [vmem:[%s857_s1 + $0x78] sm:$0xff]  }
   0x8   :  { %583 = vmatpush3.bf16.msra.mxu1 %v629_v6  ;;  %545 = vmatprep.subr.bf16.mxu0 %v630_v7  ;;  %v643_v21 = vld [vmem:[%s857_s1 + $0x30] sm:$0xff]   ;;  %v646_v28 = vld [vmem:[%s857_s1 + $0x38] sm:$0xff]   ;;  %v92_v29 = vcombine.high %v506_v23, %v506_v23 }
   0x9   :  { %584 = vmatprep.subr.bf16.mxu1 %v678_v2  ;;  %v644_v22 = vld [vmem:[%s857_s1 + $0xb0] sm:$0xff]   ;;  %v647_v31 = vld [vmem:[%s857_s1 + $0xb8] sm:$0xff]  }
   0xb   :  { %546 = vmatpush3.bf16.msra.mxu0 %v631_v8 }
   0xc   :  { %585 = vmatpush3.bf16.msra.mxu1 %v632_v9  ;;  %547 = vmatprep.subr.bf16.mxu0 %v633_v10 }
   0xd   :  { %586 = vmatprep.subr.bf16.mxu1 %v678_v2 }
   0xf   :  { %548 = vmatpush3.bf16.msra.mxu0 %v634_v11 }
  0x10   :  { %587 = vmatpush3.bf16.msra.mxu1 %v635_v12  ;;  %549 = vmatprep.subr.bf16.mxu0 %v636_v13 }
  0x11   :  { %588 = vmatprep.subr.bf16.mxu1 %v678_v2 }
  0x13   :  { %550 = vmatpush3.bf16.msra.mxu0 %v637_v14 }
  0x14   :  { %589 = vmatpush3.bf16.msra.mxu1 %v638_v15  ;;  %551 = vmatprep.subr.bf16.mxu0 %v639_v16 }
  0x15   :  { %590 = vmatprep.subr.bf16.mxu1 %v678_v2 }
  0x17   :  { %552 = vmatpush3.bf16.msra.mxu0 %v640_v17 }
  0x18   :  { %591 = vmatpush3.bf16.msra.mxu1 %v641_v18  ;;  %553 = vmatprep.subr.bf16.mxu0 %v642_v19 }
  0x19   :  { %592 = vmatprep.subr.bf16.mxu1 %v678_v2 }
  0x1b   :  { %554 = vmatpush3.bf16.msra.mxu0 %v643_v21 }
  0x1c   :  { %593 = vmatpush3.bf16.msra.mxu1 %v644_v22  ;;  %555 = vmatprep.subr.bf16.mxu0 %v645_v24 }
  0x1d   :  { %594 = vmatprep.subr.bf16.mxu1 %v678_v2 }
  0x1e   :  { %12 = vsyncpa [#allocation3], 0  ;;  %v106_v33 = vrot.slane %v92_v29, %v98_v32  ;;  %v99_v34 = vrot.slane %v506_v23, %v98_v32  ;;  %v648_v35 = vld [vmem:[%s859_s3] sm:$0xff]   ;;  %v649_v37 = vld [vmem:[%s859_s3 + $0x8] sm:$0xff]   ;;  %vm376_vm1 = vcmask 523264   ;;  %vm445_vm2 = vcmask 261120  }
  0x1f   :  { %556 = vmatpush3.bf16.msra.mxu0 %v646_v28  ;;  %v650_v38 = vld [vmem:[%s859_s3 + $0x10] sm:$0xff]   ;;  %v651_v39 = vld [vmem:[%s859_s3 + $0x18] sm:$0xff]   ;;  %v652_v40 = vld [vmem:[%s861_s5] sm:$0xff]   ;;  %s681_s19 = smov [#allocation2]   ;;  %vm489_vm3 = vcmask 74752  }
  0x20   :  { %287 = vmatprep.mubr.bf16.mxu0 %v106_v33  ;;  %595 = vmatpush3.bf16.msra.mxu1 %v647_v31  ;;  %v107_v36 = vcombine.high %v99_v34, %v99_v34  ;;  %v505_v43 = vld [vmem:[%s858_s2] ss:$0 sm:$0xff]  ;;  %v653_v55 = vld [vmem:[%s861_s5 + $0x8] sm:$0xff]   ;;  %s497_s5 = sshll.u32 %s681_s19, 4  ;;  %s498_s5 = int_to_ptr.vmem [resolvable:$true] %s497_s5 }
  0x21   :  { %600 = vmatprep.subr.bf16.mxu0 %v678_v2  ;;  %612 = vmatprep.subr.bf16.mxu1 %v678_v2  ;;  %v531_v56 = vld [vmem:[%s860_s4] ss:$0 sm:$0xff]  ;;  %s654_s4 = scalar_lea.vmem %s498_s5, 32  ;;  %p659_p1 = scmp.lt.s32.totalorder %s498_s5, %s498_s5 }
  0x22   :  { %288 = vmatmul.mubr.bf16.vlgmr.msra.gmra.mrb[0].mxu0 %v99_v34  ;;  %v537_v0 = vld [vmem:[%s862_s6] ss:$0 sm:$0xff]  ;;  %p655_p0 = scmp.ne.s32.totalorder %s498_s5, %s654_s4  ;;  %p660_p2 = scmp.lt.s32.totalorder %s654_s4, %s654_s4 }
  0x23   :  { %597 = vmatmul.mubr.bf16.vlgmr.msra.gmra.mrb[0].mxu1 %v107_v36  ;;  %601 = vmatpush3.bf16.msra.mxu0 %v648_v35 }
  0x24   :  { %602 = vmatprep.subr.bf16.mxu0 %v678_v2  ;;  %608 = vmatprep.mubr.msk.bf16.mxu0 %vm679_vm0, %v678_v2  ;;  %p661_p3 = por %p660_p2, %p659_p1 }
  0x25   :  { %616 = vmatprep.mubr.msk.bf16.mxu1 %vm679_vm0, %v678_v2  ;;  %613 = vmatpush3.bf16.msra.mxu1 %v652_v40 }
  0x26   :  { %614 = vmatprep.subr.bf16.mxu1 %v678_v2  ;;  %p662_p4 = pnand %p661_p3, %p655_p0 }
  0x27   :  { %603 = vmatpush3.bf16.msra.mxu0 %v649_v37 }
  0x28   :  { %604 = vmatprep.subr.bf16.mxu0 %v678_v2 }
  0x29   :  { %615 = vmatpush3.bf16.msra.mxu1 %v653_v55 }
  0x2b   :  { %605 = vmatpush3.bf16.msra.mxu0 %v650_v38 }
  0x2c   :  { %606 = vmatprep.subr.bf16.mxu0 %v678_v2 }
  0x2f   :  { %607 = vmatpush3.bf16.msra.mxu0 %v651_v39 }
  0xf5   :  { %v557_v41 = vpop.f32.mrb[0].mxu0 }
  0xf6   :  { %v558_v42 = vpop.f32.mrb[1].mxu0  ;;  %v329_v44 = vpop.f32.mrb[0].mxu1 }
  0xf7   :  { %v559_v45 = vadd.f32 %v558_v42, %v557_v41  ;;  %v560_v46 = vpop.f32.mrb[2].mxu0  ;;  %v598_v47 = vpop.f32.mrb[1].mxu1 }
  0xf8   :  { %v561_v48 = vpop.f32.mrb[3].mxu0  ;;  %v332_v49 = vpop.f32.mrb[2].mxu1 }
  0xf9   :  { %v290_v50 = vadd.f32 %v559_v45, %v505_v43  ;;  %v599_v51 = vpop.f32.mrb[3].mxu1 }
  0xfb   :  { %v330_v52 = vadd.f32 %v329_v44, %v290_v50 }
  0xfd   :  { %v335_v53 = vmax.f32 %v330_v52, 0.0 }
  0xff   :  { %v336_v54 = vpack.c.bf16 %v335_v53, %v335_v53 }
 0x101   :  { %609 = vmatmul.mubr.msk.bf16.vlgmr.msra.gmra.mrb[4].mxu0 %vm376_vm1, %v336_v54 }
 0x1d4   :  { %v414_v57 = vpop.f32.mrb[4].mxu0 }
 0x1d5   :  { %v415_v58 = vadd.f32 %v531_v56, %v414_v57  ;;  %v610_v59 = vpop.f32.mrb[5].mxu0 }
 0x1d6   :  { %v417_v60 = vpop.f32.mrb[6].mxu0 }
 0x1d7   :  { %v420_v61 = vmax.f32 %v415_v58, 0.0  ;;  %v611_v62 = vpop.f32.mrb[7].mxu0 }
 0x1d9   :  { %v421_v63 = vpack.c.bf16 %v420_v61, %v420_v61 }
 0x1db   :  { %617 = vmatmul.mubr.msk.bf16.vlgmr.msra.gmra.mrb[4].mxu1 %vm445_vm2, %v421_v63 }
 0x2ae   :  { %v483_v1 = vpop.f32.mrb[4].mxu1 }
 0x2af   :  { %v484_v2 = vadd.f32 %v537_v0, %v483_v1  ;;  %v618_v3 = vpop.f32.mrb[5].mxu1 }
 0x2b0   :  { %v486_v4 = vpop.f32.mrb[6].mxu1 }
 0x2b1   :  { %v619_v5 = vpop.f32.mrb[7].mxu1  ;;  %490 = vst.msk [vmem:[#allocation2] sm:$0x3] %vm489_vm3, %v484_v2 }
 0x2b2   :  { %665 = shalt.err (!%p662_p4)
}
 0x2b3   :  { %s666_s6 = scalar_lea.hbm %s863_s7, 32 }
 0x2b4   :  { %p667_p5 = scmp.ne.s32.totalorder %s863_s7, %s666_s6  ;;  %p670_p6 = scmp.lt.u32.totalorder %s666_s6, %s863_s7 }
 0x2b6   :  { %p672_p7 = pnand %p670_p6, %p667_p5 }
 0x2b8   :  { %675 = shalt.err (!%p672_p7)
}
 0x2b9   :  { %500 = dma.vmem_to_hbm [thread:$0]  %s498_s5, 32, %s863_s7, [#allocation3]  }
 0x2ba   :  { %676 = dma.done.wait [#allocation3], 32  }
 0x2bb   :  { %677 = vsyncadd [#allocation3], 4294967264 }
 0x2bc   :  { %504 = vsyncpa [#allocation3], 1 }

// kernel: cnn3d_forward.4
= control target key start
LH: loop header
LB: loop body
LE: loop exit
PB: predicated region body
PF: predicated region fallthrough
CT: control target
= control target key end

     0   :  { %v2352_v1 = vmov 0   ;;  %v2353_v39 = vmov 0.0   ;;  %vm2354_vm0 = vmmov 0   ;;  %s2946_s1 = inlined_call_operand.vmem [shape: bf16[2,896,128], index: 1, kind: input, shape index: {}]   ;;  %s2947_s0 = inlined_call_operand.vmem [shape: bf16[48,896], index: 0, kind: input, shape index: {}]   ;;  %s2948_s2 = inlined_call_operand.vmem [shape: f32[48,1], index: 2, kind: input, shape index: {}]   ;;  %s2949_s3 = inlined_call_operand.vmem [shape: bf16[2,48,128], index: 3, kind: output, shape index: {}]  }
   0x1   :  { %v2210_v0 = vld [vmem:[%s2946_s1 + $0x40] sm:$0xff]   ;;  %2208 = vset.pattern.permute.xlu0 %v2352_v1  ;;  %2209 = vset.pattern.permute.xlu1 %v2352_v1  ;;  %v2214_v5 = vld [vmem:[%s2946_s1 + $0x48] sm:$0xff]   ;;  %v2218_v9 = vld [vmem:[%s2946_s1 + $0x50] sm:$0xff]  }
   0x2   :  { %v2211_v2 = vld [vmem:[%s2946_s1] sm:$0xff]   ;;  %1923 = vmatprep.subr.bf16.mxu0 %v2210_v0  ;;  %v2215_v6 = vld [vmem:[%s2946_s1 + $0x8] sm:$0xff]   ;;  %v2219_v10 = vld [vmem:[%s2946_s1 + $0x10] sm:$0xff]  }
   0x3   :  { %v2212_v3 = vld [vmem:[%s2946_s1 + $0xc0] sm:$0xff]   ;;  %1924 = vmatpush3.bf16.msra.mxu0 %v2211_v2  ;;  %v2216_v7 = vld [vmem:[%s2946_s1 + $0xc8] sm:$0xff]   ;;  %v2220_v11 = vld [vmem:[%s2946_s1 + $0xd0] sm:$0xff]  }
   0x4   :  { %v2213_v4 = vld [vmem:[%s2946_s1 + $0x80] sm:$0xff]   ;;  %1957 = vmatprep.subr.bf16.mxu1 %v2212_v3  ;;  %1925 = vmatprep.subr.bf16.mxu0 %v2214_v5  ;;  %v2217_v8 = vld [vmem:[%s2946_s1 + $0x88] sm:$0xff]   ;;  %v2221_v12 = vld [vmem:[%s2946_s1 + $0x90] sm:$0xff]  }
   0x5   :  { %1958 = vmatpush3.bf16.msra.mxu1 %v2213_v4  ;;  %v2222_v13 = vld [vmem:[%s2946_s1 + $0x58] sm:$0xff]   ;;  %v2226_v17 = vld [vmem:[%s2946_s1 + $0x60] sm:$0xff]   ;;  %v2230_v21 = vld [vmem:[%s2946_s1 + $0x68] sm:$0xff]  }
   0x6   :  { %1959 = vmatprep.subr.bf16.mxu1 %v2216_v7  ;;  %v2223_v14 = vld [vmem:[%s2946_s1 + $0x18] sm:$0xff]   ;;  %v2227_v18 = vld [vmem:[%s2946_s1 + $0x20] sm:$0xff]   ;;  %v2231_v22 = vld [vmem:[%s2946_s1 + $0x28] sm:$0xff]  }
   0x7   :  { %1926 = vmatpush3.bf16.msra.mxu0 %v2215_v6  ;;  %v2224_v15 = vld [vmem:[%s2946_s1 + $0xd8] sm:$0xff]   ;;  %v2228_v19 = vld [vmem:[%s2946_s1 + $0xe0] sm:$0xff]   ;;  %v2232_v23 = vld [vmem:[%s2946_s1 + $0xe8] sm:$0xff]  }
   0x8   :  { %1927 = vmatprep.subr.bf16.mxu0 %v2218_v9  ;;  %v2225_v16 = vld [vmem:[%s2946_s1 + $0x98] sm:$0xff]   ;;  %v2229_v20 = vld [vmem:[%s2946_s1 + $0xa0] sm:$0xff]   ;;  %v2233_v24 = vld [vmem:[%s2946_s1 + $0xa8] sm:$0xff]  }
   0x9   :  { %1960 = vmatpush3.bf16.msra.mxu1 %v2217_v8  ;;  %v2234_v25 = vld [vmem:[%s2946_s1 + $0x70] sm:$0xff]   ;;  %v2238_v29 = vld [vmem:[%s2946_s1 + $0x78] sm:$0xff]   ;;  %v2476_v33 = vld [vmem:[%s2947_s0 + $0x4] ss:$28 sps:$4 sm:$0xff]  }
   0xa   :  { %1961 = vmatprep.subr.bf16.mxu1 %v2220_v11  ;;  %v2235_v26 = vld [vmem:[%s2946_s1 + $0x30] sm:$0xff]   ;;  %v2239_v30 = vld [vmem:[%s2946_s1 + $0x38] sm:$0xff]   ;;  %663 = vmatprep.mubr.bf16.mxu0 %v2476_v33  ;;  %v2245_v35 = vld [vmem:[%s2946_s1 + $0x140] sm:$0xff]  }
   0xb   :  { %1928 = vmatpush3.bf16.msra.mxu0 %v2219_v10  ;;  %v2236_v27 = vld [vmem:[%s2946_s1 + $0xf0] sm:$0xff]   ;;  %v2240_v31 = vld [vmem:[%s2946_s1 + $0xf8] sm:$0xff]   ;;  %v2489_v36 = vld [vmem:[%s2947_s0 + $0x8] ss:$28 sps:$4 sm:$0xff]  }
   0xc   :  { %1929 = vmatprep.subr.bf16.mxu0 %v2222_v13  ;;  %v2237_v28 = vld [vmem:[%s2946_s1 + $0xb0] sm:$0xff]   ;;  %v2471_v32 = vld [vmem:[%s2947_s0] ss:$28 sps:$4 sm:$0xff]   ;;  %v2494_v37 = vld [vmem:[%s2947_s0 + $0xc] ss:$28 sps:$4 sm:$0xff]  }
   0xd   :  { %1962 = vmatpush3.bf16.msra.mxu1 %v2221_v12  ;;  %v2244_v34 = vld [vmem:[%s2946_s1 + $0xb8] sm:$0xff]   ;;  %v2249_v38 = vld [vmem:[%s2946_s1 + $0x100] sm:$0xff]   ;;  %720 = vmatprep.mubr.bf16.mxu1 %v2494_v37  ;;  %v2251_v41 = vld [vmem:[%s2946_s1 + $0x148] sm:$0xff]  }
   0xe   :  { %1963 = vmatprep.subr.bf16.mxu1 %v2224_v15  ;;  %v2250_v40 = vld [vmem:[%s2946_s1 + $0x180] sm:$0xff]   ;;  %v2252_v42 = vld [vmem:[%s2946_s1 + $0x108] sm:$0xff]   ;;  %v2254_v44 = vld [vmem:[%s2946_s1 + $0x150] sm:$0xff]  }
   0xf   :  { %1930 = vmatpush3.bf16.msra.mxu0 %v2223_v14  ;;  %v2253_v43 = vld [vmem:[%s2946_s1 + $0x188] sm:$0xff]   ;;  %v2255_v45 = vld [vmem:[%s2946_s1 + $0x110] sm:$0xff]   ;;  %v2257_v47 = vld [vmem:[%s2946_s1 + $0x158] sm:$0xff]  }
  0x10   :  { %1931 = vmatprep.subr.bf16.mxu0 %v2226_v17  ;;  %v2256_v46 = vld [vmem:[%s2946_s1 + $0x190] sm:$0xff]   ;;  %v2531_v48 = vld [vmem:[%s2947_s0 + $0x3c] ss:$28 sps:$4 sm:$0xff]   ;;  %v2544_v51 = vld [vmem:[%s2947_s0 + $0x44] ss:$28 sps:$4 sm:$0xff]  }
  0x11   :  { %1964 = vmatpush3.bf16.msra.mxu1 %v2225_v16  ;;  %v2260_v49 = vld [vmem:[%s2946_s1 + $0x118] sm:$0xff]   ;;  %v2266_v54 = vld [vmem:[%s2946_s1 + $0x160] sm:$0xff]   ;;  %v2269_v57 = vld [vmem:[%s2946_s1 + $0x168] sm:$0xff]  }
  0x12   :  { %1965 = vmatprep.subr.bf16.mxu1 %v2228_v19  ;;  %v2539_v50 = vld [vmem:[%s2947_s0 + $0x38] ss:$28 sps:$4 sm:$0xff]   ;;  %v2556_v53 = vld [vmem:[%s2947_s0 + $0x40] ss:$28 sps:$4 sm:$0xff]   ;;  %v2272_v59 = vld [vmem:[%s2946_s1 + $0x128] sm:$0xff]  }
  0x13   :  { %1932 = vmatpush3.bf16.msra.mxu0 %v2227_v18  ;;  %v2264_v52 = vld [vmem:[%s2946_s1 + $0x198] sm:$0xff]   ;;  %v2267_v55 = vld [vmem:[%s2946_s1 + $0x120] sm:$0xff]   ;;  %v2575_v58 = vld [vmem:[%s2947_s0 + $0x74] ss:$28 sps:$4 sm:$0xff]  }
  0x14   :  { %1933 = vmatprep.subr.bf16.mxu0 %v2230_v21  ;;  %v2268_v56 = vld [vmem:[%s2946_s1 + $0x1a0] sm:$0xff]   ;;  %v2583_v60 = vld [vmem:[%s2947_s0 + $0x70] ss:$28 sps:$4 sm:$0xff]   ;;  %v2590_v61 = vld [vmem:[%s2947_s0 + $0x7c] ss:$28 sps:$4 sm:$0xff]  }
  0x15   :  { %1966 = vmatpush3.bf16.msra.mxu1 %v2229_v20  ;;  %v2276_v62 = vld [vmem:[%s2946_s1 + $0x1a8] sm:$0xff]   ;;  %v2599_v63 = vld [vmem:[%s2947_s0 + $0x78] ss:$28 sps:$4 sm:$0xff]   ;;  %v2287_v8 = vld [vmem:[%s2946_s1 + $0x200] sm:$0xff]  }
  0x16   :  { %1967 = vmatprep.subr.bf16.mxu1 %v2232_v23  ;;  %v2278_v0 = vld [vmem:[%s2946_s1 + $0x170] sm:$0xff]   ;;  %v2281_v3 = vld [vmem:[%s2946_s1 + $0x178] sm:$0xff]   ;;  %v2288_v9 = vld [vmem:[%s2946_s1 + $0x1c0] sm:$0xff]  }
  0x17   :  { %1934 = vmatpush3.bf16.msra.mxu0 %v2231_v22  ;;  %v2279_v1 = vld [vmem:[%s2946_s1 + $0x130] sm:$0xff]   ;;  %v2282_v4 = vld [vmem:[%s2946_s1 + $0x138] sm:$0xff]   ;;  %v2289_v10 = vld [vmem:[%s2946_s1 + $0x280] sm:$0xff]  }
  0x18   :  { %1935 = vmatprep.subr.bf16.mxu0 %v2234_v25  ;;  %v2280_v2 = vld [vmem:[%s2946_s1 + $0x1b0] sm:$0xff]   ;;  %v2286_v7 = vld [vmem:[%s2946_s1 + $0x1b8] sm:$0xff]   ;;  %v2291_v12 = vld [vmem:[%s2946_s1 + $0x240] sm:$0xff]  }
  0x19   :  { %1968 = vmatpush3.bf16.msra.mxu1 %v2233_v24  ;;  %v2624_v5 = vld [vmem:[%s2947_s0 + $0x10] ss:$28 sps:$4 sm:$0xff]   ;;  %v2649_v11 = vld [vmem:[%s2947_s0 + $0x18] ss:$28 sps:$4 sm:$0xff]   ;;  %v2677_v18 = vld [vmem:[%s2947_s0 + $0x48] ss:$28 sps:$4 sm:$0xff]  }
  0x1a   :  { %1969 = vmatprep.subr.bf16.mxu1 %v2236_v27  ;;  %v2630_v6 = vld [vmem:[%s2947_s0 + $0x14] ss:$28 sps:$4 sm:$0xff]   ;;  %v2292_v13 = vld [vmem:[%s2946_s1 + $0x208] sm:$0xff]   ;;  %v2303_v23 = vld [vmem:[%s2946_s1 + $0x218] sm:$0xff]  }
  0x1b   :  { %1936 = vmatpush3.bf16.msra.mxu0 %v2235_v26  ;;  %v2293_v14 = vld [vmem:[%s2946_s1 + $0x1c8] sm:$0xff]   ;;  %v2299_v19 = vld [vmem:[%s2946_s1 + $0x210] sm:$0xff]   ;;  %v2305_v25 = vld [vmem:[%s2946_s1 + $0x1d8] sm:$0xff]  }
  0x1c   :  { %1937 = vmatprep.subr.bf16.mxu0 %v2238_v29  ;;  %v2294_v15 = vld [vmem:[%s2946_s1 + $0x288] sm:$0xff]   ;;  %v2300_v20 = vld [vmem:[%s2946_s1 + $0x1d0] sm:$0xff]   ;;  %v2306_v26 = vld [vmem:[%s2946_s1 + $0x298] sm:$0xff]  }
  0x1d   :  { %1970 = vmatpush3.bf16.msra.mxu1 %v2237_v28  ;;  %v2669_v16 = vld [vmem:[%s2947_s0 + $0x4c] ss:$28 sps:$4 sm:$0xff]   ;;  %v2301_v21 = vld [vmem:[%s2946_s1 + $0x290] sm:$0xff]   ;;  %v2711_v27 = vld [vmem:[%s2947_s0 + $0x84] ss:$28 sps:$4 sm:$0xff]  }
  0x1e   :  { %1971 = vmatprep.subr.bf16.mxu1 %v2240_v31  ;;  %v2297_v17 = vld [vmem:[%s2946_s1 + $0x248] sm:$0xff]   ;;  %v2302_v22 = vld [vmem:[%s2946_s1 + $0x250] sm:$0xff]   ;;  %v2309_v28 = vld [vmem:[%s2946_s1 + $0x258] sm:$0xff]  }
  0x1f   :  { %1938 = vmatpush3.bf16.msra.mxu0 %v2239_v30  ;;  %v2699_v24 = vld [vmem:[%s2947_s0 + $0x50] ss:$28 sps:$4 sm:$0xff]   ;;  %v2721_v29 = vld [vmem:[%s2947_s0 + $0x80] ss:$28 sps:$4 sm:$0xff]  }
  0x20   :  { %1991 = vmatprep.subr.bf16.mxu0 %v2245_v35  ;;  %v2311_v30 = vld [vmem:[%s2946_s1 + $0x220] sm:$0xff]  }
  0x21   :  { %1972 = vmatpush3.bf16.msra.mxu1 %v2244_v34  ;;  %v2312_v31 = vld [vmem:[%s2946_s1 + $0x1e0] sm:$0xff]  }
  0x22   :  { %664 = vmatmul.mubr.bf16.vlgmr.msra.gmra.mrb[0].mxu0 %v2471_v32  ;;  %2149 = vmatprep.subr.bf16.mxu1 %v2353_v39  ;;  %v2313_v34 = vld [vmem:[%s2946_s1 + $0x2a0] sm:$0xff]  }
  0x23   :  { %1992 = vmatpush3.bf16.msra.mxu0 %v2249_v38  ;;  %671 = vmatprep.mubr.bf16.mxu0 %v2531_v48  ;;  %v2314_v35 = vld [vmem:[%s2946_s1 + $0x260] sm:$0xff]   ;;  %v2315_v38 = vld [vmem:[%s2946_s1 + $0x228] sm:$0xff]  }
  0x24   :  { %721 = vmatmul.mubr.bf16.vlgmr.msra.gmra.mrb[0].mxu1 %v2489_v36  ;;  %1993 = vmatprep.subr.bf16.mxu0 %v2251_v41  ;;  %v2318_v41 = vld [vmem:[%s2946_s1 + $0x2a8] sm:$0xff]  }
  0x25   :  { %2150 = vmatpush3.bf16.msra.mxu1 %v2250_v40  ;;  %728 = vmatprep.mubr.bf16.mxu1 %v2544_v51  ;;  %v2744_v40 = vld [vmem:[%s2947_s0 + $0x88] ss:$28 sps:$4 sm:$0xff]  }
  0x26   :  { %2151 = vmatprep.subr.bf16.mxu1 %v2353_v39 }
  0x27   :  { %1994 = vmatpush3.bf16.msra.mxu0 %v2252_v42  ;;  %v2319_v42 = vld [vmem:[%s2946_s1 + $0x268] sm:$0xff]  }
  0x28   :  { %1995 = vmatprep.subr.bf16.mxu0 %v2254_v44  ;;  %v2321_v44 = vld [vmem:[%s2946_s1 + $0x1f0] sm:$0xff]  }
  0x29   :  { %2152 = vmatpush3.bf16.msra.mxu1 %v2253_v43  ;;  %v2320_v43 = vld [vmem:[%s2946_s1 + $0x230] sm:$0xff]  }
  0x2a   :  { %2153 = vmatprep.subr.bf16.mxu1 %v2353_v39  ;;  %672 = vmatmul.mubr.bf16.gmra.mrb[4].mxu0 %v2539_v50 }
  0x2b   :  { %1996 = vmatpush3.bf16.msra.mxu0 %v2255_v45  ;;  %679 = vmatprep.mubr.bf16.mxu0 %v2575_v58  ;;  %v2322_v45 = vld [vmem:[%s2946_s1 + $0x2b0] sm:$0xff]  }
  0x2c   :  { %1997 = vmatprep.subr.bf16.mxu0 %v2257_v47  ;;  %729 = vmatmul.mubr.bf16.gmra.mrb[4].mxu1 %v2556_v53  ;;  %v2325_v47 = vld [vmem:[%s2946_s1 + $0x1f8] sm:$0xff]  }
  0x2d   :  { %2154 = vmatpush3.bf16.msra.mxu1 %v2256_v46  ;;  %736 = vmatprep.mubr.bf16.mxu1 %v2590_v61  ;;  %v2324_v46 = vld [vmem:[%s2946_s1 + $0x238] sm:$0xff]  }
  0x2e   :  { %2155 = vmatprep.subr.bf16.mxu1 %v2353_v39 }
  0x2f   :  { %1998 = vmatpush3.bf16.msra.mxu0 %v2260_v49  ;;  %v2326_v49 = vld [vmem:[%s2946_s1 + $0x2b8] sm:$0xff]  }
  0x30   :  { %1999 = vmatprep.subr.bf16.mxu0 %v2266_v54  ;;  %v2328_v54 = vld [vmem:[%s2946_s1 + $0x300] sm:$0xff]  }
  0x31   :  { %2156 = vmatpush3.bf16.msra.mxu1 %v2264_v52  ;;  %v2327_v52 = vld [vmem:[%s2946_s1 + $0x278] sm:$0xff]  }
  0x32   :  { %2157 = vmatprep.subr.bf16.mxu1 %v2353_v39  ;;  %680 = vmatmul.mubr.bf16.gmra.mrb[8].mxu0 %v2583_v60 }
  0x33   :  { %2000 = vmatpush3.bf16.msra.mxu0 %v2267_v55  ;;  %777 = vmatprep.mubr.bf16.mxu0 %v2630_v6  ;;  %v2329_v55 = vld [vmem:[%s2946_s1 + $0x2c0] sm:$0xff]  }
  0x34   :  { %2001 = vmatprep.subr.bf16.mxu0 %v2269_v57  ;;  %737 = vmatmul.mubr.bf16.gmra.mrb[8].mxu1 %v2599_v63  ;;  %v2331_v57 = vld [vmem:[%s2946_s1 + $0x308] sm:$0xff]  }
  0x35   :  { %2158 = vmatpush3.bf16.msra.mxu1 %v2268_v56  ;;  %2165 = vmatprep.mubr.msk.bf16.mxu1 %vm2354_vm0, %v2353_v39  ;;  %v2330_v56 = vld [vmem:[%s2946_s1 + $0x340] sm:$0xff]  }
  0x36   :  { %2159 = vmatprep.subr.bf16.mxu1 %v2353_v39 }
  0x37   :  { %2002 = vmatpush3.bf16.msra.mxu0 %v2272_v59  ;;  %v2332_v59 = vld [vmem:[%s2946_s1 + $0x2c8] sm:$0xff]  }
  0x38   :  { %2003 = vmatprep.subr.bf16.mxu0 %v2278_v0  ;;  %v2337_v0 = vld [vmem:[%s2946_s1 + $0x318] sm:$0xff]  }
  0x39   :  { %2160 = vmatpush3.bf16.msra.mxu1 %v2276_v62  ;;  %v2334_v62 = vld [vmem:[%s2946_s1 + $0x310] sm:$0xff]  }
  0x3a   :  { %2161 = vmatprep.subr.bf16.mxu1 %v2353_v39 }
  0x3b   :  { %2004 = vmatpush3.bf16.msra.mxu0 %v2279_v1  ;;  %v2340_v1 = vld [vmem:[%s2946_s1 + $0x320] sm:$0xff]  }
  0x3c   :  { %2005 = vmatprep.subr.bf16.mxu0 %v2281_v3  ;;  %v2344_v3 = vld [vmem:[%s2946_s1 + $0x2e8] sm:$0xff]  }
  0x3d   :  { %2162 = vmatpush3.bf16.msra.mxu1 %v2280_v2  ;;  %v2339_v2 = vld [vmem:[%s2946_s1 + $0x358] sm:$0xff]  }
  0x3e   :  { %2163 = vmatprep.subr.bf16.mxu1 %v2353_v39 }
  0x3f   :  { %2006 = vmatpush3.bf16.msra.mxu0 %v2282_v4  ;;  %v40_v4 = vld [vmem:[%s2948_s2 + $0x8] sm:$0xff] }
  0x40   :  { %2036 = vmatprep.subr.bf16.mxu0 %v2287_v8  ;;  %v41_v8 = vld [vmem:[%s2948_s2 + $0x10] sm:$0xff] }
  0x41   :  { %2164 = vmatpush3.bf16.msra.mxu1 %v2286_v7  ;;  %v2346_v7 = vld [vmem:[%s2946_s1 + $0x330] sm:$0xff]   ;;  %169 = vperm.xlu1 %2209, %v41_v8  }
  0x42   :  { %778 = vmatmul.mubr.bf16.vlgmr.msra.gmra.mrb[12].mxu0 %v2624_v5  ;;  %2070 = vmatprep.subr.bf16.mxu1 %v2289_v10  ;;  %v43_v10 = vld [vmem:[%s2948_s2 + $0x20] sm:$0xff] }
  0x43   :  { %2037 = vmatpush3.bf16.msra.mxu0 %v2288_v9  ;;  %785 = vmatprep.mubr.bf16.mxu0 %v2669_v16  ;;  %v2348_v9 = vld [vmem:[%s2946_s1 + $0x370] sm:$0xff]  }
  0x44   :  { %2166 = vmatmul.mubr.bf16.vlgmr.msra.gmra.mrb[12].mxu1 %v2649_v11  ;;  %2038 = vmatprep.subr.bf16.mxu0 %v2292_v13  ;;  %v2350_v13 = vld [vmem:[%s2946_s1 + $0x2f8] sm:$0xff]  }
  0x45   :  { %2071 = vmatpush3.bf16.msra.mxu1 %v2291_v12  ;;  %2169 = vmatprep.mubr.msk.bf16.mxu1 %vm2354_vm0, %v2353_v39  ;;  %v42_v12 = vld [vmem:[%s2948_s2 + $0x18] sm:$0xff] }
  0x46   :  { %2072 = vmatprep.subr.bf16.mxu1 %v2294_v15  ;;  %174 = vperm.xlu1 %2209, %v42_v12   ;;  %v44_v15 = vld [vmem:[%s2948_s2 + $0x28] sm:$0xff] }
  0x47   :  { %2039 = vmatpush3.bf16.msra.mxu0 %v2293_v14  ;;  %v2351_v14 = vld [vmem:[%s2946_s1 + $0x378] sm:$0xff]  }
  0x48   :  { %2040 = vmatprep.subr.bf16.mxu0 %v2299_v19 }
  0x49   :  { %2073 = vmatpush3.bf16.msra.mxu1 %v2297_v17 }
  0x4a   :  { %786 = vmatmul.mubr.bf16.gmra.mrb[16].mxu0 %v2677_v18  ;;  %2074 = vmatprep.subr.bf16.mxu1 %v2301_v21 }
  0x4b   :  { %2041 = vmatpush3.bf16.msra.mxu0 %v2300_v20  ;;  %793 = vmatprep.mubr.bf16.mxu0 %v2711_v27 }
  0x4c   :  { %2042 = vmatprep.subr.bf16.mxu0 %v2303_v23  ;;  %2170 = vmatmul.mubr.bf16.gmra.mrb[16].mxu1 %v2699_v24 }
  0x4d   :  { %2075 = vmatpush3.bf16.msra.mxu1 %v2302_v22  ;;  %2173 = vmatprep.mubr.msk.bf16.mxu1 %vm2354_vm0, %v2353_v39 }
  0x4e   :  { %2076 = vmatprep.subr.bf16.mxu1 %v2306_v26  ;;  %184 = vperm.xlu1 %2209, %v44_v15  }
  0x4f   :  { %2043 = vmatpush3.bf16.msra.mxu0 %v2305_v25 }
  0x50   :  { %2044 = vmatprep.subr.bf16.mxu0 %v2311_v30 }
  0x51   :  { %2077 = vmatpush3.bf16.msra.mxu1 %v2309_v28 }
  0x52   :  { %794 = vmatmul.mubr.bf16.gmra.mrb[20].mxu0 %v2721_v29  ;;  %2078 = vmatprep.subr.bf16.mxu1 %v2313_v34 }
  0x53   :  { %1376 = vmatprep.mubr.bf16.mxu0 %v2476_v33  ;;  %2045 = vmatpush3.bf16.msra.mxu0 %v2312_v31  ;;  %v2317_v33 = vld [vmem:[%s2946_s1 + $0x1e8] sm:$0xff]  }
  0x54   :  { %2046 = vmatprep.subr.bf16.mxu0 %v2315_v38  ;;  %2174 = vmatmul.mubr.bf16.gmra.mrb[20].mxu1 %v2744_v40 }
  0x55   :  { %2079 = vmatpush3.bf16.msra.mxu1 %v2314_v35  ;;  %1433 = vmatprep.mubr.bf16.mxu1 %v2494_v37  ;;  %v2323_v37 = vld [vmem:[%s2946_s1 + $0x270] sm:$0xff]  }
  0x56   :  { %2080 = vmatprep.subr.bf16.mxu1 %v2318_v41 }
  0x57   :  { %2047 = vmatpush3.bf16.msra.mxu0 %v2317_v33 }
  0x58   :  { %2048 = vmatprep.subr.bf16.mxu0 %v2320_v43 }
  0x59   :  { %2081 = vmatpush3.bf16.msra.mxu1 %v2319_v42 }
  0x5a   :  { %2082 = vmatprep.subr.bf16.mxu1 %v2322_v45 }
  0x5b   :  { %2049 = vmatpush3.bf16.msra.mxu0 %v2321_v44 }
  0x5c   :  { %2050 = vmatprep.subr.bf16.mxu0 %v2324_v46 }
  0x5d   :  { %2083 = vmatpush3.bf16.msra.mxu1 %v2323_v37 }
  0x5e   :  { %2084 = vmatprep.subr.bf16.mxu1 %v2326_v49 }
  0x5f   :  { %2051 = vmatpush3.bf16.msra.mxu0 %v2325_v47 }
  0x60   :  { %2104 = vmatprep.subr.bf16.mxu0 %v2328_v54 }
  0x61   :  { %2085 = vmatpush3.bf16.msra.mxu1 %v2327_v52 }
  0x62   :  { %1377 = vmatmul.mubr.bf16.vlgmr.msra.gmra.mrb[24].mxu0 %v2471_v32  ;;  %2177 = vmatprep.subr.bf16.mxu1 %v2353_v39  ;;  %v2333_v32 = vld [vmem:[%s2946_s1 + $0x348] sm:$0xff]  }
  0x63   :  { %2105 = vmatpush3.bf16.msra.mxu0 %v2329_v55  ;;  %1384 = vmatprep.mubr.bf16.mxu0 %v2531_v48  ;;  %v2336_v48 = vld [vmem:[%s2946_s1 + $0x350] sm:$0xff]  }
  0x64   :  { %1434 = vmatmul.mubr.bf16.vlgmr.msra.gmra.mrb[24].mxu1 %v2489_v36  ;;  %2106 = vmatprep.subr.bf16.mxu0 %v2331_v57  ;;  %v2335_v36 = vld [vmem:[%s2946_s1 + $0x2d0] sm:$0xff]  }
  0x65   :  { %2178 = vmatpush3.bf16.msra.mxu1 %v2330_v56  ;;  %1441 = vmatprep.mubr.bf16.mxu1 %v2544_v51  ;;  %v2338_v51 = vld [vmem:[%s2946_s1 + $0x2d8] sm:$0xff]  }
  0x66   :  { %2179 = vmatprep.subr.bf16.mxu1 %v2353_v39 }
  0x67   :  { %2107 = vmatpush3.bf16.msra.mxu0 %v2332_v59 }
  0x68   :  { %2108 = vmatprep.subr.bf16.mxu0 %v2334_v62 }
  0x69   :  { %2180 = vmatpush3.bf16.msra.mxu1 %v2333_v32 }
  0x6a   :  { %2181 = vmatprep.subr.bf16.mxu1 %v2353_v39  ;;  %1385 = vmatmul.mubr.bf16.gmra.mrb[28].mxu0 %v2539_v50  ;;  %v2341_v50 = vld [vmem:[%s2946_s1 + $0x2e0] sm:$0xff]  }
  0x6b   :  { %2109 = vmatpush3.bf16.msra.mxu0 %v2335_v36  ;;  %1392 = vmatprep.mubr.bf16.mxu0 %v2575_v58  ;;  %v39_v58 = vld [vmem:[%s2948_s2] sm:$0xff] }
  0x6c   :  { %2110 = vmatprep.subr.bf16.mxu0 %v2337_v0  ;;  %1442 = vmatmul.mubr.bf16.gmra.mrb[28].mxu1 %v2556_v53  ;;  %v2343_v53 = vld [vmem:[%s2946_s1 + $0x328] sm:$0xff]  }
  0x6d   :  { %2182 = vmatpush3.bf16.msra.mxu1 %v2336_v48  ;;  %1449 = vmatprep.mubr.bf16.mxu1 %v2590_v61  ;;  %v2342_v61 = vld [vmem:[%s2946_s1 + $0x360] sm:$0xff]  }
  0x6e   :  { %2183 = vmatprep.subr.bf16.mxu1 %v2353_v39  ;;  %159 = vperm.xlu0 %2208, %v39_v58  }
  0x6f   :  { %2111 = vmatpush3.bf16.msra.mxu0 %v2338_v51 }
  0x70   :  { %2112 = vmatprep.subr.bf16.mxu0 %v2340_v1 }
  0x71   :  { %2184 = vmatpush3.bf16.msra.mxu1 %v2339_v2 }
  0x72   :  { %2185 = vmatprep.subr.bf16.mxu1 %v2353_v39  ;;  %1393 = vmatmul.mubr.bf16.gmra.mrb[32].mxu0 %v2583_v60  ;;  %v2345_v60 = vld [vmem:[%s2946_s1 + $0x368] sm:$0xff]  }
  0x73   :  { %2113 = vmatpush3.bf16.msra.mxu0 %v2341_v50  ;;  %1490 = vmatprep.mubr.bf16.mxu0 %v2630_v6  ;;  %v2349_v6 = vld [vmem:[%s2946_s1 + $0x338] sm:$0xff]  }
  0x74   :  { %2114 = vmatprep.subr.bf16.mxu0 %v2343_v53  ;;  %1450 = vmatmul.mubr.bf16.gmra.mrb[32].mxu1 %v2599_v63  ;;  %v2347_v63 = vld [vmem:[%s2946_s1 + $0x2f0] sm:$0xff]  }
  0x75   :  { %2186 = vmatpush3.bf16.msra.mxu1 %v2342_v61  ;;  %164 = vperm.xlu0 %2208, %v40_v4  }
  0x76   :  { %2187 = vmatprep.subr.bf16.mxu1 %v2353_v39  ;;  %2193 = vmatprep.mubr.msk.bf16.mxu1 %vm2354_vm0, %v2353_v39 }
  0x77   :  { %2115 = vmatpush3.bf16.msra.mxu0 %v2344_v3 }
  0x78   :  { %2116 = vmatprep.subr.bf16.mxu0 %v2346_v7 }
  0x79   :  { %2188 = vmatpush3.bf16.msra.mxu1 %v2345_v60  ;;  %179 = vperm.xlu0 %2208, %v43_v10  }
  0x7a   :  { %2189 = vmatprep.subr.bf16.mxu1 %v2353_v39 }
  0x7b   :  { %2117 = vmatpush3.bf16.msra.mxu0 %v2347_v63 }
  0x7c   :  { %2118 = vmatprep.subr.bf16.mxu0 %v2349_v6 }
  0x7d   :  { %2190 = vmatpush3.bf16.msra.mxu1 %v2348_v9 }
  0x7e   :  { %2191 = vmatprep.subr.bf16.mxu1 %v2353_v39 }
  0x7f   :  { %2119 = vmatpush3.bf16.msra.mxu0 %v2350_v13 }
  0x81   :  { %2192 = vmatpush3.bf16.msra.mxu1 %v2351_v14 }
  0x82   :  { %1491 = vmatmul.mubr.bf16.vlgmr.msra.gmra.mrb[36].mxu0 %v2624_v5 }
  0x83   :  { %1498 = vmatprep.mubr.bf16.mxu0 %v2669_v16 }
  0x84   :  { %2194 = vmatmul.mubr.bf16.vlgmr.msra.gmra.mrb[36].mxu1 %v2649_v11 }
  0x85   :  { %2197 = vmatprep.mubr.msk.bf16.mxu1 %vm2354_vm0, %v2353_v39 }
  0x8a   :  { %1499 = vmatmul.mubr.bf16.gmra.mrb[40].mxu0 %v2677_v18 }
  0x8b   :  { %1506 = vmatprep.mubr.bf16.mxu0 %v2711_v27 }
  0x8c   :  { %2198 = vmatmul.mubr.bf16.gmra.mrb[40].mxu1 %v2699_v24 }
  0x8d   :  { %2201 = vmatprep.mubr.msk.bf16.mxu1 %vm2354_vm0, %v2353_v39 }
  0x92   :  { %1507 = vmatmul.mubr.bf16.gmra.mrb[44].mxu0 %v2721_v29 }
  0x94   :  { %2202 = vmatmul.mubr.bf16.gmra.mrb[44].mxu1 %v2744_v40 }
  0xc0   :  { %v2910_v31 = vpop.permute.xlu1 %169 }
  0xc5   :  { %v2912_v33 = vpop.permute.xlu1 %174 }
  0xcd   :  { %v2918_v36 = vpop.permute.xlu1 %184 }
  0xed   :  { %v2904_v16 = vpop.permute.xlu0 %159 }
  0xf4   :  { %v2907_v26 = vpop.permute.xlu0 %164 }
  0xf5   :  { %v1939_v5 = vpop.f32.mrb[0].mxu0 }
  0xf6   :  { %v1940_v11 = vpop.f32.mrb[1].mxu0 }
  0xf7   :  { %v1941_v17 = vadd.f32 %v1940_v11, %v1939_v5  ;;  %v1942_v19 = vpop.f32.mrb[2].mxu0  ;;  %v1973_v20 = vpop.f32.mrb[0].mxu1 }
  0xf8   :  { %v1943_v21 = vpop.f32.mrb[3].mxu0  ;;  %v1974_v23 = vpop.f32.mrb[1].mxu1 }
  0xf9   :  { %v666_v18 = vadd.f32 %v1941_v17, %v2904_v16  ;;  %v1944_v22 = vadd.f32 %v1943_v21, %v1942_v19  ;;  %v1975_v24 = vadd.f32 %v1974_v23, %v1973_v20  ;;  %v1976_v25 = vpop.f32.mrb[2].mxu1  ;;  %v2916_v59 = vpop.permute.xlu0 %179 }
  0xfa   :  { %v1977_v27 = vpop.f32.mrb[3].mxu1 }
  0xfb   :  { %v669_v39 = vadd.f32 %v1944_v22, %v2907_v26  ;;  %v723_v28 = vadd.f32 %v1975_v24, %v666_v18  ;;  %v1978_v29 = vadd.f32 %v1977_v27, %v1976_v25 }
  0xfd   :  { %v726_v30 = vadd.f32 %v1978_v29, %v669_v39  ;;  %v1945_v34 = vpop.f32.mrb[4].mxu0 }
  0xfe   :  { %v1946_v35 = vpop.f32.mrb[5].mxu0 }
  0xff   :  { %v1947_v38 = vadd.f32 %v1946_v35, %v1945_v34  ;;  %v1948_v40 = vpop.f32.mrb[6].mxu0  ;;  %v1979_v41 = vpop.f32.mrb[4].mxu1 }
 0x100   :  { %v1949_v42 = vpop.f32.mrb[7].mxu0  ;;  %v1980_v45 = vpop.f32.mrb[5].mxu1 }
 0x101   :  { %v674_v43 = vadd.f32 %v1947_v38, %v2910_v31  ;;  %v1950_v44 = vadd.f32 %v1949_v42, %v1948_v40  ;;  %v1981_v37 = vadd.f32 %v1980_v45, %v1979_v41  ;;  %v1982_v46 = vpop.f32.mrb[6].mxu1 }
 0x102   :  { %v1983_v49 = vpop.f32.mrb[7].mxu1 }
 0x103   :  { %v677_v47 = vadd.f32 %v1950_v44, %v2912_v33  ;;  %v731_v52 = vadd.f32 %v1981_v37, %v674_v43  ;;  %v1984_v54 = vadd.f32 %v1983_v49, %v1982_v46 }
 0x105   :  { %v1951_v55 = vpop.f32.mrb[8].mxu0  ;;  %v734_v56 = vadd.f32 %v1984_v54, %v677_v47 }
 0x106   :  { %v1952_v57 = vpop.f32.mrb[9].mxu0 }
 0x107   :  { %v1953_v32 = vadd.f32 %v1952_v57, %v1951_v55  ;;  %v1954_v62 = vpop.f32.mrb[10].mxu0  ;;  %v1985_v48 = vpop.f32.mrb[8].mxu1 }
 0x108   :  { %v1955_v0 = vpop.f32.mrb[11].mxu0  ;;  %v1986_v1 = vpop.f32.mrb[9].mxu1 }
 0x109   :  { %v1956_v51 = vadd.f32 %v1955_v0, %v1954_v62  ;;  %v682_v2 = vadd.f32 %v1953_v32, %v2916_v59  ;;  %v1987_v50 = vadd.f32 %v1986_v1, %v1985_v48  ;;  %v1988_v53 = vpop.f32.mrb[10].mxu1 }
 0x10a   :  { %v1989_v61 = vpop.f32.mrb[11].mxu1 }
 0x10b   :  { %v685_v58 = vadd.f32 %v1956_v51, %v2918_v36  ;;  %v739_v3 = vadd.f32 %v1987_v50, %v682_v2  ;;  %v1990_v4 = vadd.f32 %v1989_v61, %v1988_v53 }
 0x10d   :  { %v742_v7 = vadd.f32 %v1990_v4, %v685_v58 }
 0x115   :  { %v2007_v60 = vpop.f32.mrb[12].mxu0 }
 0x116   :  { %v2008_v63 = vpop.f32.mrb[13].mxu0 }
 0x117   :  { %v2009_v6 = vadd.f32 %v2008_v63, %v2007_v60  ;;  %v2010_v8 = vpop.f32.mrb[14].mxu0  ;;  %v836_v9 = vpop.f32.mrb[12].mxu1 }
 0x118   :  { %v2011_v10 = vpop.f32.mrb[15].mxu0  ;;  %v2167_v12 = vpop.f32.mrb[13].mxu1 }
 0x119   :  { %v2012_v13 = vadd.f32 %v2011_v10, %v2010_v8  ;;  %v780_v14 = vadd.f32 %v2009_v6, %v723_v28  ;;  %v839_v15 = vpop.f32.mrb[14].mxu1 }
 0x11a   :  { %v2168_v5 = vpop.f32.mrb[15].mxu1 }
 0x11b   :  { %v837_v11 = vadd.f32 %v836_v9, %v780_v14  ;;  %v783_v17 = vadd.f32 %v2012_v13, %v726_v30 }
 0x11d   :  { %v840_v19 = vadd.f32 %v839_v15, %v783_v17  ;;  %v2013_v20 = vpop.f32.mrb[16].mxu0  ;;  %v859_v18 = vmax.f32 %v837_v11, 0.0 }
 0x11e   :  { %v2014_v21 = vpop.f32.mrb[17].mxu0 }
 0x11f   :  { %v860_v22 = vmax.f32 %v840_v19, 0.0  ;;  %v2015_v23 = vadd.f32 %v2014_v21, %v2013_v20  ;;  %v2016_v24 = vpop.f32.mrb[18].mxu0  ;;  %v844_v28 = vpop.f32.mrb[16].mxu1 }
 0x120   :  { %v2017_v25 = vpop.f32.mrb[19].mxu0  ;;  %v2171_v38 = vpop.f32.mrb[17].mxu1 }
 0x121   :  { %v1891_v39 = vpack.c.bf16 %v860_v22, %v859_v18  ;;  %v2018_v27 = vadd.f32 %v2017_v25, %v2016_v24  ;;  %v788_v29 = vadd.f32 %v2015_v23, %v731_v52  ;;  %v847_v30 = vpop.f32.mrb[18].mxu1 }
 0x122   :  { %v2172_v41 = vpop.f32.mrb[19].mxu1 }
 0x123   :  { %1892 = vst [vmem:[%s2949_s3] sm:$0xff] %v1891_v39   ;;  %v791_v34 = vadd.f32 %v2018_v27, %v734_v56  ;;  %v845_v35 = vadd.f32 %v844_v28, %v788_v29 }
 0x125   :  { %v848_v40 = vadd.f32 %v847_v30, %v791_v34  ;;  %v2019_v42 = vpop.f32.mrb[20].mxu0  ;;  %v861_v43 = vmax.f32 %v845_v35, 0.0 }
 0x126   :  { %v2020_v45 = vpop.f32.mrb[21].mxu0 }
 0x127   :  { %v862_v44 = vmax.f32 %v848_v40, 0.0  ;;  %v2021_v37 = vadd.f32 %v2020_v45, %v2019_v42  ;;  %v2022_v46 = vpop.f32.mrb[22].mxu0  ;;  %v852_v55 = vpop.f32.mrb[20].mxu1 }
 0x128   :  { %v2023_v49 = vpop.f32.mrb[23].mxu0  ;;  %v2175_v32 = vpop.f32.mrb[21].mxu1 }
 0x129   :  { %v1896_v47 = vpack.c.bf16 %v862_v44, %v861_v43  ;;  %v2024_v52 = vadd.f32 %v2023_v49, %v2022_v46  ;;  %v796_v54 = vadd.f32 %v2021_v37, %v739_v3  ;;  %v855_v62 = vpop.f32.mrb[22].mxu1 }
 0x12a   :  { %v2176_v0 = vpop.f32.mrb[23].mxu1 }
 0x12b   :  { %1918 = vst [vmem:[%s2949_s3 + $0x8] sm:$0xff] %v1896_v47   ;;  %v799_v56 = vadd.f32 %v2024_v52, %v742_v7  ;;  %v853_v57 = vadd.f32 %v852_v55, %v796_v54 }
 0x12d   :  { %v856_v48 = vadd.f32 %v855_v62, %v799_v56  ;;  %v863_v51 = vmax.f32 %v853_v57, 0.0 }
 0x12f   :  { %v864_v1 = vmax.f32 %v856_v48, 0.0 }
 0x131   :  { %v1901_v2 = vpack.c.bf16 %v864_v1, %v863_v51 }
 0x133   :  { %1919 = vst [vmem:[%s2949_s3 + $0x10] sm:$0xff] %v1901_v2  }
 0x135   :  { %v2052_v50 = vpop.f32.mrb[24].mxu0 }
 0x136   :  { %v2053_v53 = vpop.f32.mrb[25].mxu0 }
 0x137   :  { %v2054_v58 = vadd.f32 %v2053_v53, %v2052_v50  ;;  %v2055_v61 = vpop.f32.mrb[26].mxu0  ;;  %v2086_v3 = vpop.f32.mrb[24].mxu1 }
 0x138   :  { %v2056_v4 = vpop.f32.mrb[27].mxu0  ;;  %v2087_v60 = vpop.f32.mrb[25].mxu1 }
 0x139   :  { %v1379_v7 = vadd.f32 %v2054_v58, %v2904_v16  ;;  %v2057_v63 = vadd.f32 %v2056_v4, %v2055_v61  ;;  %v2088_v6 = vadd.f32 %v2087_v60, %v2086_v3  ;;  %v2089_v8 = vpop.f32.mrb[26].mxu1 }
 0x13a   :  { %v2090_v9 = vpop.f32.mrb[27].mxu1 }
 0x13b   :  { %v1382_v10 = vadd.f32 %v2057_v63, %v2907_v26  ;;  %v1436_v12 = vadd.f32 %v2088_v6, %v1379_v7  ;;  %v2091_v13 = vadd.f32 %v2090_v9, %v2089_v8 }
 0x13d   :  { %v1439_v14 = vadd.f32 %v2091_v13, %v1382_v10  ;;  %v2058_v15 = vpop.f32.mrb[28].mxu0 }
 0x13e   :  { %v2059_v5 = vpop.f32.mrb[29].mxu0 }
 0x13f   :  { %v2060_v11 = vadd.f32 %v2059_v5, %v2058_v15  ;;  %v2061_v17 = vpop.f32.mrb[30].mxu0  ;;  %v2092_v19 = vpop.f32.mrb[28].mxu1 }
 0x140   :  { %v2062_v20 = vpop.f32.mrb[31].mxu0  ;;  %v2093_v21 = vpop.f32.mrb[29].mxu1 }
 0x141   :  { %v1387_v18 = vadd.f32 %v2060_v11, %v2910_v31  ;;  %v2063_v22 = vadd.f32 %v2062_v20, %v2061_v17  ;;  %v2094_v16 = vadd.f32 %v2093_v21, %v2092_v19  ;;  %v2095_v23 = vpop.f32.mrb[30].mxu1 }
 0x142   :  { %v2096_v24 = vpop.f32.mrb[31].mxu1 }
 0x143   :  { %v1390_v25 = vadd.f32 %v2063_v22, %v2912_v33  ;;  %v1444_v39 = vadd.f32 %v2094_v16, %v1387_v18  ;;  %v2097_v26 = vadd.f32 %v2096_v24, %v2095_v23 }
 0x145   :  { %v1447_v27 = vadd.f32 %v2097_v26, %v1390_v25  ;;  %v2064_v29 = vpop.f32.mrb[32].mxu0 }
 0x146   :  { %v2065_v28 = vpop.f32.mrb[33].mxu0 }
 0x147   :  { %v2066_v34 = vadd.f32 %v2065_v28, %v2064_v29  ;;  %v2067_v35 = vpop.f32.mrb[34].mxu0  ;;  %v2098_v38 = vpop.f32.mrb[32].mxu1 }
 0x148   :  { %v2068_v30 = vpop.f32.mrb[35].mxu0  ;;  %v2099_v40 = vpop.f32.mrb[33].mxu1 }
 0x149   :  { %v1395_v41 = vadd.f32 %v2066_v34, %v2916_v59  ;;  %v2069_v42 = vadd.f32 %v2068_v30, %v2067_v35  ;;  %v2100_v31 = vadd.f32 %v2099_v40, %v2098_v38  ;;  %v2101_v43 = vpop.f32.mrb[34].mxu1 }
 0x14a   :  { %v2102_v44 = vpop.f32.mrb[35].mxu1 }
 0x14b   :  { %v1398_v45 = vadd.f32 %v2069_v42, %v2918_v36  ;;  %v1452_v37 = vadd.f32 %v2100_v31, %v1395_v41  ;;  %v2103_v33 = vadd.f32 %v2102_v44, %v2101_v43 }
 0x14d   :  { %v1455_v46 = vadd.f32 %v2103_v33, %v1398_v45 }
 0x155   :  { %v2120_v47 = vpop.f32.mrb[36].mxu0 }
 0x156   :  { %v2121_v49 = vpop.f32.mrb[37].mxu0 }
 0x157   :  { %v2122_v52 = vadd.f32 %v2121_v49, %v2120_v47  ;;  %v2123_v54 = vpop.f32.mrb[38].mxu0  ;;  %v1549_v55 = vpop.f32.mrb[36].mxu1 }
 0x158   :  { %v2124_v56 = vpop.f32.mrb[39].mxu0  ;;  %v2195_v57 = vpop.f32.mrb[37].mxu1 }
 0x159   :  { %v1493_v32 = vadd.f32 %v2122_v52, %v1436_v12  ;;  %v2125_v62 = vadd.f32 %v2124_v56, %v2123_v54  ;;  %v1552_v48 = vpop.f32.mrb[38].mxu1 }
 0x15a   :  { %v2196_v59 = vpop.f32.mrb[39].mxu1 }
 0x15b   :  { %v1550_v0 = vadd.f32 %v1549_v55, %v1493_v32  ;;  %v1496_v51 = vadd.f32 %v2125_v62, %v1439_v14 }
 0x15d   :  { %v1553_v1 = vadd.f32 %v1552_v48, %v1496_v51  ;;  %v2126_v2 = vpop.f32.mrb[40].mxu0  ;;  %v1572_v36 = vmax.f32 %v1550_v0, 0.0 }
 0x15e   :  { %v2127_v50 = vpop.f32.mrb[41].mxu0 }
 0x15f   :  { %v1573_v53 = vmax.f32 %v1553_v1, 0.0  ;;  %v2128_v58 = vadd.f32 %v2127_v50, %v2126_v2  ;;  %v2129_v61 = vpop.f32.mrb[42].mxu0  ;;  %v1557_v3 = vpop.f32.mrb[40].mxu1 }
 0x160   :  { %v2130_v4 = vpop.f32.mrb[43].mxu0  ;;  %v2199_v60 = vpop.f32.mrb[41].mxu1 }
 0x161   :  { %v1906_v7 = vpack.c.bf16 %v1573_v53, %v1572_v36  ;;  %v1501_v63 = vadd.f32 %v2128_v58, %v1444_v39  ;;  %v2131_v6 = vadd.f32 %v2130_v4, %v2129_v61  ;;  %v1560_v8 = vpop.f32.mrb[42].mxu1 }
 0x162   :  { %v2200_v9 = vpop.f32.mrb[43].mxu1 }
 0x163   :  { %1920 = vst [vmem:[%s2949_s3 + $0x18] sm:$0xff] %v1906_v7   ;;  %v1558_v10 = vadd.f32 %v1557_v3, %v1501_v63  ;;  %v1504_v12 = vadd.f32 %v2131_v6, %v1447_v27 }
 0x165   :  { %v1561_v13 = vadd.f32 %v1560_v8, %v1504_v12  ;;  %v2132_v14 = vpop.f32.mrb[44].mxu0  ;;  %v1574_v5 = vmax.f32 %v1558_v10, 0.0 }
 0x166   :  { %v2133_v15 = vpop.f32.mrb[45].mxu0 }
 0x167   :  { %v1575_v11 = vmax.f32 %v1561_v13, 0.0  ;;  %v2134_v17 = vadd.f32 %v2133_v15, %v2132_v14  ;;  %v2135_v19 = vpop.f32.mrb[46].mxu0  ;;  %v1565_v20 = vpop.f32.mrb[44].mxu1 }
 0x168   :  { %v2136_v21 = vpop.f32.mrb[47].mxu0  ;;  %v2203_v18 = vpop.f32.mrb[45].mxu1 }
 0x169   :  { %v1911_v22 = vpack.c.bf16 %v1575_v11, %v1574_v5  ;;  %v1509_v16 = vadd.f32 %v2134_v17, %v1452_v37  ;;  %v2137_v23 = vadd.f32 %v2136_v21, %v2135_v19  ;;  %v1568_v24 = vpop.f32.mrb[46].mxu1 }
 0x16a   :  { %v2204_v25 = vpop.f32.mrb[47].mxu1 }
 0x16b   :  { %1921 = vst [vmem:[%s2949_s3 + $0x20] sm:$0xff] %v1911_v22   ;;  %v1566_v39 = vadd.f32 %v1565_v20, %v1509_v16  ;;  %v1512_v26 = vadd.f32 %v2137_v23, %v1455_v46 }
 0x16d   :  { %v1569_v27 = vadd.f32 %v1568_v24, %v1512_v26  ;;  %v1576_v29 = vmax.f32 %v1566_v39, 0.0 }
 0x16f   :  { %v1577_v28 = vmax.f32 %v1569_v27, 0.0 }
 0x171   :  { %v1916_v34 = vpack.c.bf16 %v1577_v28, %v1576_v29 }
 0x173   :  { %1922 = vst [vmem:[%s2949_s3 + $0x28] sm:$0xff] %v1916_v34  }

</bundles_post_ra>
